<compile_context>
chip_gen: v7x
topology: tpu7x:2x2x1
jax: 0.10.0
libtpu: 0.0.40
codegen_flags: <defaults>
</compile_context>

<pallas_src>
import functools

import jax
import jax.numpy as jnp
from jax.experimental import pallas as pl
from jax.experimental.pallas import tpu as pltpu

KSIZE = 4          # kernel_size default of the module
FOLDS = (6, 4, 2)  # rotation-fold schedules fused (the r_folds == 2 branch)
LANE = 128         # TPU lane width; inner chunk size


def _round_up(a, b):
    return (a + b - 1) // b * b


def _rotate_hw(w, angle_deg):
    """Rotate over the last two axes about the center (bilinear).

    Mirrors scipy.ndimage.rotate(..., axes=(3,4), reshape=False,
    mode='constant', cval=0) used in std_forward (order-1, see TODO above).
    """
    kh, kw = w.shape[-2], w.shape[-1]
    ang = jnp.deg2rad(jnp.float32(angle_deg))
    c, s = jnp.cos(ang), jnp.sin(ang)
    cy, cx = (kh - 1) / 2.0, (kw - 1) / 2.0
    yy, xx = jnp.meshgrid(jnp.arange(kh, dtype=jnp.float32),
                          jnp.arange(kw, dtype=jnp.float32), indexing="ij")
    src_y = c * (yy - cy) + s * (xx - cx) + cy
    src_x = -s * (yy - cy) + c * (xx - cx) + cx
    coords = jnp.stack([src_y, src_x])
    flat = w.reshape(-1, kh, kw)
    rot = jax.vmap(lambda img: jax.scipy.ndimage.map_coordinates(
        img, coords, order=1, mode="constant", cval=0.0))(flat)
    return rot.reshape(w.shape)


def _set_weight(key, c, k):
    # set_weight(): uniform_rand(0, 2, [1, C, C, k, k]) = (0-2)*rand + 2.
    return (0.0 - 2.0) * jax.random.uniform(
        key, (1, c, c, k, k), dtype=jnp.float32) + 2.0


def _build_weight_slab(weight, r_folds, c, cp, k):
    """std_forward's rotation schedule for one fresh weight, as a padded slab.

    weight: (1, Cout, Cin, k, k).  Returns (r_folds*cp, k*k*cp) where
    row = rot*cp + cout and col = (p*k+q)*cp + cin (cout/cin zero-padded to
    cp so every in-kernel slice of the response slab is 8-row aligned).
    """
    angle = 360 // r_folds
    wgt = weight
    for _ in range(r_folds):              # pre-rotation loop in std_forward
        wgt = _rotate_hw(wgt, angle)
    blocks = []
    for _ in range(r_folds):
        wm = jnp.transpose(wgt[0], (0, 2, 3, 1))          # (Cout, p, q, Cin)
        wm = jnp.pad(wm, ((0, cp - c), (0, 0), (0, 0), (0, cp - c)))
        blocks.append(wm.reshape(cp, k * k * cp))
        wgt = _rotate_hw(wgt, angle)      # rotate after each use
    return jnp.concatenate(blocks, axis=0)                # (r_folds*cp, K)


def _symmetry_kernel(x_ref, halo_ref, w_ref, o_ref, *, cp, folds, k, img_w, tl):
    """One (image, pixel-block) grid step.

    x_ref:    (1, cp, TBLK)  flat-pixel main block of the zero-padded image
    halo_ref: (1, cp, H128)  the next H128 lanes (right halo of this block)
    w_ref:    (sum(folds)*cp, k*k*cp) fused rotated-weight slab (resident)
    o_ref:    (1, cp, TBLK)  lane-dense output block, same flat-pixel layout
    """
    tblk = x_ref.shape[-1]
    offsets = [p * img_w + q for p in range(k) for q in range(k)]
    wv = w_ref[...]                                        # (R, K), stays hot

    def read_window(start):
        """Lanes [start, start+tl) across main block + halo (static slices)."""
        if start + tl <= tblk:
            return x_ref[0, :, start:start + tl]
        if start >= tblk:
            return halo_ref[0, :, start - tblk:start - tblk + tl]
        head = x_ref[0, :, start:tblk]
        tail = halo_ref[0, :, :start + tl - tblk]
        return jnp.concatenate([head, tail], axis=-1)

    for t in range(tblk // tl):                            # static unroll
        base = t * tl
        # Fused im2col: 16 shifted (p, q) views, each (cp, tl), 8-row aligned.
        patches = jnp.concatenate([read_window(base + off) for off in offsets],
                                  axis=0)                  # (k*k*cp, tl)
        scores = []
        row = 0
        for r in folds:
            # All r rotated responses of this schedule in one MXU matmul.
            resp = jnp.dot(wv[row:row + r * cp, :], patches,
                           preferred_element_type=jnp.float32,
                           precision=jax.lax.Precision.HIGHEST)  # (r*cp, tl)
            # Mean-centered two-pass unbiased variance (matches torch.std and
            # avoids the cancellation of the E[x^2]-E[x]^2 form in f32).
            s = resp[0:cp]
            for i in range(1, r):
                s = s + resp[i * cp:(i + 1) * cp]
            mean = s * (1.0 / r)
            ss = jnp.zeros_like(mean)
            for i in range(r):
                d = resp[i * cp:(i + 1) * cp] - mean
                ss = ss + d * d
            var = ss * (1.0 / (r - 1))
            scores.append(1.0 - jnp.sqrt(jnp.maximum(var, 0.0)))
            row += r * cp
        a, b, c = scores
        mu = (a + b + c) * (1.0 / 3.0)
        var3 = ((a - mu) ** 2 + (b - mu) ** 2 + (c - mu) ** 2) * 0.5
        o_ref[0, :, base:base + tl] = jnp.sqrt(jnp.maximum(var3, 0.0))


def symmetry_filter_forward(x, key, kernel_size=KSIZE):
    """Forward pass of symmetry_filter with default hyper-parameters."""
    n, c, h, w = x.shape
    k = kernel_size
    oh, ow = h - k + 1, w - k + 1
    # padding=(0,0,0,0), same=False -> reflect pad is a no-op; noise_level=0.

    cp = _round_up(c, 8)                 # pad channels so slices are aligned

    # One fresh random weight per std_forward call (the r_folds=2 branch calls
    # std_forward three times with r_folds = 2, 4, 6).
    k2, k4, k6 = jax.random.split(key, 3)
    w6 = _build_weight_slab(_set_weight(k6, c, k), 6, c, cp, k)
    w4 = _build_weight_slab(_set_weight(k4, c, k), 4, c, cp, k)
    w2 = _build_weight_slab(_set_weight(k2, c, k), 2, c, cp, k)
    w_all = jnp.concatenate([w6, w4, w2], axis=0)          # (12*cp, k*k*cp)
    r_rows, kdim = w_all.shape

    # Flat-pixel layout: output position j = oh_i*W + ow_i reads input lanes
    # j + p*W + q; columns ow_i >= OW are garbage and sliced off afterwards.
    lout = oh * w                        # valid flat output length per image
    max_off = (k - 1) * w + (k - 1)
    h128 = _round_up(max_off, LANE)      # right-halo size (128-aligned)

    # Per-grid-step pixel block: multiple of the halo size, ~2k lanes max, and
    # aim for >= 4 total grid steps so both v7x TensorCores still pipeline.
    blocks_per_img = max(1, -(-4 // n))
    tblk = _round_up(max(1, -(-lout // blocks_per_img)), h128)
    tblk = max(h128, min(tblk, _round_up(2048, h128)))
    nblk = -(-lout // tblk)
    lpad = nblk * tblk + h128            # room for the last block's halo

    xf = x.astype(jnp.float32).reshape(n, c, h * w)
    xf = jnp.pad(xf, ((0, 0), (0, cp - c), (0, lpad - h * w)))

    ratio = tblk // h128                 # halo block-index stride
    kern = functools.partial(_symmetry_kernel, cp=cp, folds=FOLDS, k=k,
                             img_w=w, tl=LANE)

    # VMEM: double-buffered main/out/halo blocks + the resident weight slab.
    blk_bytes = 4 * (2 * 2 * cp * tblk + 2 * cp * h128 + 2 * r_rows * kdim)
    vmem_limit = int(min(max(4 * blk_bytes, 32 << 20), 96 << 20))

    out = pl.pallas_call(
        kern,
        out_shape=jax.ShapeDtypeStruct((n, cp, nblk * tblk), jnp.float32),
        grid_spec=pltpu.PrefetchScalarGridSpec(
            num_scalar_prefetch=0,
            grid=(n, nblk),
            in_specs=[
                pl.BlockSpec((1, cp, tblk), lambda ni, bi: (ni, 0, bi)),
                pl.BlockSpec((1, cp, h128),
                             lambda ni, bi: (ni, 0, (bi + 1) * ratio)),
                pl.BlockSpec((r_rows, kdim), lambda ni, bi: (0, 0)),
            ],
            out_specs=pl.BlockSpec((1, cp, tblk), lambda ni, bi: (ni, 0, bi)),
        ),
        compiler_params=pltpu.CompilerParams(
            dimension_semantics=("parallel", "parallel"),
            vmem_limit_bytes=vmem_limit),
    )(xf, xf, w_all)

    # Already (N, C, flat-pixel) ordered: slice + reshape, no transpose.
    out = out[:, :c, :lout].reshape(n, c, oh, w)[:, :, :, :ow]
    # scalar(): img -= img.min(); img /= img.max()  (no zero guard, as in ref).
    out = out - out.min()
    out = out / out.max()
    return out


if __name__ == "__main__":
    key = jax.random.PRNGKey(0)
    kx, kw = jax.random.split(key)
    x = jax.random.uniform(kx, (2, 4, 16, 16), dtype=jnp.float32)

    y = jax.jit(functools.partial(symmetry_filter_forward,
                                  kernel_size=KSIZE))(x, kw)
    jax.block_until_ready(y)
    assert y.shape == (2, 4, 13, 13), y.shape
    assert bool(jnp.isfinite(y).all())
    print("KERNEL_OK")
</pallas_src>

<mosaic_0001>
module attributes {stable_mosaic.version = 11 : i64} {
  func.func @_symmetry_kernel(%arg0: i32, %arg1: i32, %arg2: memref<1x8x128xf32, #tpu.memory_space<vmem>>, %arg3: memref<1x8x128xf32, #tpu.memory_space<vmem>>, %arg4: memref<96x128xf32, #tpu.memory_space<vmem>>, %arg5: memref<1x8x128xf32, #tpu.memory_space<vmem>>) attributes {dimension_semantics = [#tpu.dimension_semantics<parallel>, #tpu.dimension_semantics<parallel>], iteration_bounds = array<i64: 2, 2>, scalar_prefetch = 0 : i64, scratch_operands = 0 : i64, tpu.core_type = #tpu.core_type<tc>, window_params = [{transform_indices = @transform_0, window_bounds = array<i64: 1, 8, 128>}, {transform_indices = @transform_1, window_bounds = array<i64: 1, 8, 128>}, {pipeline_mode = #tpu.pipeline_mode<synchronous>, transform_indices = @transform_2, window_bounds = array<i64: 96, 128>}, {transform_indices = @transform_3, window_bounds = array<i64: 1, 8, 128>}]} {
    %c0 = arith.constant 0 : index
    %c0_0 = arith.constant 0 : index
    %0 = vector.load %arg4[%c0, %c0_0] : memref<96x128xf32, #tpu.memory_space<vmem>>, vector<96x128xf32>
    %c0_1 = arith.constant 0 : index
    %c0_2 = arith.constant 0 : index
    %c0_3 = arith.constant 0 : index
    %1 = vector.load %arg2[%c0_1, %c0_2, %c0_3] : memref<1x8x128xf32, #tpu.memory_space<vmem>>, vector<1x8x128xf32>
    %2 = vector.shape_cast %1 : vector<1x8x128xf32> to vector<8x128xf32>
    %c0_4 = arith.constant 0 : index
    %c0_5 = arith.constant 0 : index
    %c1 = arith.constant 1 : index
    %3 = vector.load %arg2[%c0_4, %c0_5, %c1] : memref<1x8x128xf32, #tpu.memory_space<vmem>>, vector<1x8x127xf32>
    %4 = vector.shape_cast %3 : vector<1x8x127xf32> to vector<8x127xf32>
    %c0_6 = arith.constant 0 : index
    %c0_7 = arith.constant 0 : index
    %c0_8 = arith.constant 0 : index
    %5 = vector.load %arg3[%c0_6, %c0_7, %c0_8] : memref<1x8x128xf32, #tpu.memory_space<vmem>>, vector<1x8x1xf32>
    %6 = vector.shape_cast %5 : vector<1x8x1xf32> to vector<8x1xf32>
    %7 = tpu.concatenate %4, %6 in 1 : vector<8x127xf32>, vector<8x1xf32> -> vector<8x128xf32>
    %c0_9 = arith.constant 0 : index
    %c0_10 = arith.constant 0 : index
    %c2 = arith.constant 2 : index
    %8 = vector.load %arg2[%c0_9, %c0_10, %c2] : memref<1x8x128xf32, #tpu.memory_space<vmem>>, vector<1x8x126xf32>
    %9 = vector.shape_cast %8 : vector<1x8x126xf32> to vector<8x126xf32>
    %c0_11 = arith.constant 0 : index
    %c0_12 = arith.constant 0 : index
    %c0_13 = arith.constant 0 : index
    %10 = vector.load %arg3[%c0_11, %c0_12, %c0_13] : memref<1x8x128xf32, #tpu.memory_space<vmem>>, vector<1x8x2xf32>
    %11 = vector.shape_cast %10 : vector<1x8x2xf32> to vector<8x2xf32>
    %12 = tpu.concatenate %9, %11 in 1 : vector<8x126xf32>, vector<8x2xf32> -> vector<8x128xf32>
    %c0_14 = arith.constant 0 : index
    %c0_15 = arith.constant 0 : index
    %c3 = arith.constant 3 : index
    %13 = vector.load %arg2[%c0_14, %c0_15, %c3] : memref<1x8x128xf32, #tpu.memory_space<vmem>>, vector<1x8x125xf32>
    %14 = vector.shape_cast %13 : vector<1x8x125xf32> to vector<8x125xf32>
    %c0_16 = arith.constant 0 : index
    %c0_17 = arith.constant 0 : index
    %c0_18 = arith.constant 0 : index
    %15 = vector.load %arg3[%c0_16, %c0_17, %c0_18] : memref<1x8x128xf32, #tpu.memory_space<vmem>>, vector<1x8x3xf32>
    %16 = vector.shape_cast %15 : vector<1x8x3xf32> to vector<8x3xf32>
    %17 = tpu.concatenate %14, %16 in 1 : vector<8x125xf32>, vector<8x3xf32> -> vector<8x128xf32>
    %c0_19 = arith.constant 0 : index
    %c0_20 = arith.constant 0 : index
    %c16 = arith.constant 16 : index
    %18 = vector.load %arg2[%c0_19, %c0_20, %c16] : memref<1x8x128xf32, #tpu.memory_space<vmem>>, vector<1x8x112xf32>
    %19 = vector.shape_cast %18 : vector<1x8x112xf32> to vector<8x112xf32>
    %c0_21 = arith.constant 0 : index
    %c0_22 = arith.constant 0 : index
    %c0_23 = arith.constant 0 : index
    %20 = vector.load %arg3[%c0_21, %c0_22, %c0_23] : memref<1x8x128xf32, #tpu.memory_space<vmem>>, vector<1x8x16xf32>
    %21 = vector.shape_cast %20 : vector<1x8x16xf32> to vector<8x16xf32>
    %22 = tpu.concatenate %19, %21 in 1 : vector<8x112xf32>, vector<8x16xf32> -> vector<8x128xf32>
    %c0_24 = arith.constant 0 : index
    %c0_25 = arith.constant 0 : index
    %c17 = arith.constant 17 : index
    %23 = vector.load %arg2[%c0_24, %c0_25, %c17] : memref<1x8x128xf32, #tpu.memory_space<vmem>>, vector<1x8x111xf32>
    %24 = vector.shape_cast %23 : vector<1x8x111xf32> to vector<8x111xf32>
    %c0_26 = arith.constant 0 : index
    %c0_27 = arith.constant 0 : index
    %c0_28 = arith.constant 0 : index
    %25 = vector.load %arg3[%c0_26, %c0_27, %c0_28] : memref<1x8x128xf32, #tpu.memory_space<vmem>>, vector<1x8x17xf32>
    %26 = vector.shape_cast %25 : vector<1x8x17xf32> to vector<8x17xf32>
    %27 = tpu.concatenate %24, %26 in 1 : vector<8x111xf32>, vector<8x17xf32> -> vector<8x128xf32>
    %c0_29 = arith.constant 0 : index
    %c0_30 = arith.constant 0 : index
    %c18 = arith.constant 18 : index
    %28 = vector.load %arg2[%c0_29, %c0_30, %c18] : memref<1x8x128xf32, #tpu.memory_space<vmem>>, vector<1x8x110xf32>
    %29 = vector.shape_cast %28 : vector<1x8x110xf32> to vector<8x110xf32>
    %c0_31 = arith.constant 0 : index
    %c0_32 = arith.constant 0 : index
    %c0_33 = arith.constant 0 : index
    %30 = vector.load %arg3[%c0_31, %c0_32, %c0_33] : memref<1x8x128xf32, #tpu.memory_space<vmem>>, vector<1x8x18xf32>
    %31 = vector.shape_cast %30 : vector<1x8x18xf32> to vector<8x18xf32>
    %32 = tpu.concatenate %29, %31 in 1 : vector<8x110xf32>, vector<8x18xf32> -> vector<8x128xf32>
    %c0_34 = arith.constant 0 : index
    %c0_35 = arith.constant 0 : index
    %c19 = arith.constant 19 : index
    %33 = vector.load %arg2[%c0_34, %c0_35, %c19] : memref<1x8x128xf32, #tpu.memory_space<vmem>>, vector<1x8x109xf32>
    %34 = vector.shape_cast %33 : vector<1x8x109xf32> to vector<8x109xf32>
    %c0_36 = arith.constant 0 : index
    %c0_37 = arith.constant 0 : index
    %c0_38 = arith.constant 0 : index
    %35 = vector.load %arg3[%c0_36, %c0_37, %c0_38] : memref<1x8x128xf32, #tpu.memory_space<vmem>>, vector<1x8x19xf32>
    %36 = vector.shape_cast %35 : vector<1x8x19xf32> to vector<8x19xf32>
    %37 = tpu.concatenate %34, %36 in 1 : vector<8x109xf32>, vector<8x19xf32> -> vector<8x128xf32>
    %c0_39 = arith.constant 0 : index
    %c0_40 = arith.constant 0 : index
    %c32 = arith.constant 32 : index
    %38 = vector.load %arg2[%c0_39, %c0_40, %c32] : memref<1x8x128xf32, #tpu.memory_space<vmem>>, vector<1x8x96xf32>
    %39 = vector.shape_cast %38 : vector<1x8x96xf32> to vector<8x96xf32>
    %c0_41 = arith.constant 0 : index
    %c0_42 = arith.constant 0 : index
    %c0_43 = arith.constant 0 : index
    %40 = vector.load %arg3[%c0_41, %c0_42, %c0_43] : memref<1x8x128xf32, #tpu.memory_space<vmem>>, vector<1x8x32xf32>
    %41 = vector.shape_cast %40 : vector<1x8x32xf32> to vector<8x32xf32>
    %42 = tpu.concatenate %39, %41 in 1 : vector<8x96xf32>, vector<8x32xf32> -> vector<8x128xf32>
    %c0_44 = arith.constant 0 : index
    %c0_45 = arith.constant 0 : index
    %c33 = arith.constant 33 : index
    %43 = vector.load %arg2[%c0_44, %c0_45, %c33] : memref<1x8x128xf32, #tpu.memory_space<vmem>>, vector<1x8x95xf32>
    %44 = vector.shape_cast %43 : vector<1x8x95xf32> to vector<8x95xf32>
    %c0_46 = arith.constant 0 : index
    %c0_47 = arith.constant 0 : index
    %c0_48 = arith.constant 0 : index
    %45 = vector.load %arg3[%c0_46, %c0_47, %c0_48] : memref<1x8x128xf32, #tpu.memory_space<vmem>>, vector<1x8x33xf32>
    %46 = vector.shape_cast %45 : vector<1x8x33xf32> to vector<8x33xf32>
    %47 = tpu.concatenate %44, %46 in 1 : vector<8x95xf32>, vector<8x33xf32> -> vector<8x128xf32>
    %c0_49 = arith.constant 0 : index
    %c0_50 = arith.constant 0 : index
    %c34 = arith.constant 34 : index
    %48 = vector.load %arg2[%c0_49, %c0_50, %c34] : memref<1x8x128xf32, #tpu.memory_space<vmem>>, vector<1x8x94xf32>
    %49 = vector.shape_cast %48 : vector<1x8x94xf32> to vector<8x94xf32>
    %c0_51 = arith.constant 0 : index
    %c0_52 = arith.constant 0 : index
    %c0_53 = arith.constant 0 : index
    %50 = vector.load %arg3[%c0_51, %c0_52, %c0_53] : memref<1x8x128xf32, #tpu.memory_space<vmem>>, vector<1x8x34xf32>
    %51 = vector.shape_cast %50 : vector<1x8x34xf32> to vector<8x34xf32>
    %52 = tpu.concatenate %49, %51 in 1 : vector<8x94xf32>, vector<8x34xf32> -> vector<8x128xf32>
    %c0_54 = arith.constant 0 : index
    %c0_55 = arith.constant 0 : index
    %c35 = arith.constant 35 : index
    %53 = vector.load %arg2[%c0_54, %c0_55, %c35] : memref<1x8x128xf32, #tpu.memory_space<vmem>>, vector<1x8x93xf32>
    %54 = vector.shape_cast %53 : vector<1x8x93xf32> to vector<8x93xf32>
    %c0_56 = arith.constant 0 : index
    %c0_57 = arith.constant 0 : index
    %c0_58 = arith.constant 0 : index
    %55 = vector.load %arg3[%c0_56, %c0_57, %c0_58] : memref<1x8x128xf32, #tpu.memory_space<vmem>>, vector<1x8x35xf32>
    %56 = vector.shape_cast %55 : vector<1x8x35xf32> to vector<8x35xf32>
    %57 = tpu.concatenate %54, %56 in 1 : vector<8x93xf32>, vector<8x35xf32> -> vector<8x128xf32>
    %c0_59 = arith.constant 0 : index
    %c0_60 = arith.constant 0 : index
    %c48 = arith.constant 48 : index
    %58 = vector.load %arg2[%c0_59, %c0_60, %c48] : memref<1x8x128xf32, #tpu.memory_space<vmem>>, vector<1x8x80xf32>
    %59 = vector.shape_cast %58 : vector<1x8x80xf32> to vector<8x80xf32>
    %c0_61 = arith.constant 0 : index
    %c0_62 = arith.constant 0 : index
    %c0_63 = arith.constant 0 : index
    %60 = vector.load %arg3[%c0_61, %c0_62, %c0_63] : memref<1x8x128xf32, #tpu.memory_space<vmem>>, vector<1x8x48xf32>
    %61 = vector.shape_cast %60 : vector<1x8x48xf32> to vector<8x48xf32>
    %62 = tpu.concatenate %59, %61 in 1 : vector<8x80xf32>, vector<8x48xf32> -> vector<8x128xf32>
    %c0_64 = arith.constant 0 : index
    %c0_65 = arith.constant 0 : index
    %c49 = arith.constant 49 : index
    %63 = vector.load %arg2[%c0_64, %c0_65, %c49] : memref<1x8x128xf32, #tpu.memory_space<vmem>>, vector<1x8x79xf32>
    %64 = vector.shape_cast %63 : vector<1x8x79xf32> to vector<8x79xf32>
    %c0_66 = arith.constant 0 : index
    %c0_67 = arith.constant 0 : index
    %c0_68 = arith.constant 0 : index
    %65 = vector.load %arg3[%c0_66, %c0_67, %c0_68] : memref<1x8x128xf32, #tpu.memory_space<vmem>>, vector<1x8x49xf32>
    %66 = vector.shape_cast %65 : vector<1x8x49xf32> to vector<8x49xf32>
    %67 = tpu.concatenate %64, %66 in 1 : vector<8x79xf32>, vector<8x49xf32> -> vector<8x128xf32>
    %c0_69 = arith.constant 0 : index
    %c0_70 = arith.constant 0 : index
    %c50 = arith.constant 50 : index
    %68 = vector.load %arg2[%c0_69, %c0_70, %c50] : memref<1x8x128xf32, #tpu.memory_space<vmem>>, vector<1x8x78xf32>
    %69 = vector.shape_cast %68 : vector<1x8x78xf32> to vector<8x78xf32>
    %c0_71 = arith.constant 0 : index
    %c0_72 = arith.constant 0 : index
    %c0_73 = arith.constant 0 : index
    %70 = vector.load %arg3[%c0_71, %c0_72, %c0_73] : memref<1x8x128xf32, #tpu.memory_space<vmem>>, vector<1x8x50xf32>
    %71 = vector.shape_cast %70 : vector<1x8x50xf32> to vector<8x50xf32>
    %72 = tpu.concatenate %69, %71 in 1 : vector<8x78xf32>, vector<8x50xf32> -> vector<8x128xf32>
    %c0_74 = arith.constant 0 : index
    %c0_75 = arith.constant 0 : index
    %c51 = arith.constant 51 : index
    %73 = vector.load %arg2[%c0_74, %c0_75, %c51] : memref<1x8x128xf32, #tpu.memory_space<vmem>>, vector<1x8x77xf32>
    %74 = vector.shape_cast %73 : vector<1x8x77xf32> to vector<8x77xf32>
    %c0_76 = arith.constant 0 : index
    %c0_77 = arith.constant 0 : index
    %c0_78 = arith.constant 0 : index
    %75 = vector.load %arg3[%c0_76, %c0_77, %c0_78] : memref<1x8x128xf32, #tpu.memory_space<vmem>>, vector<1x8x51xf32>
    %76 = vector.shape_cast %75 : vector<1x8x51xf32> to vector<8x51xf32>
    %77 = tpu.concatenate %74, %76 in 1 : vector<8x77xf32>, vector<8x51xf32> -> vector<8x128xf32>
    %78 = tpu.concatenate %2, %7, %12, %17, %22, %27, %32, %37, %42, %47, %52, %57, %62, %67, %72, %77 in 0 : vector<8x128xf32>, vector<8x128xf32>, vector<8x128xf32>, vector<8x128xf32>, vector<8x128xf32>, vector<8x128xf32>, vector<8x128xf32>, vector<8x128xf32>, vector<8x128xf32>, vector<8x128xf32>, vector<8x128xf32>, vector<8x128xf32>, vector<8x128xf32>, vector<8x128xf32>, vector<8x128xf32>, vector<8x128xf32> -> vector<128x128xf32>
    %79 = vector.extract_strided_slice %0 {offsets = [0, 0], sizes = [48, 128], strides = [1, 1]} : vector<96x128xf32> to vector<48x128xf32>
    %cst = arith.constant dense<0.000000e+00> : vector<48x128xf32>
    %80 = tpu.matmul %79, %78, %cst {dimension_numbers = #tpu.dot_dimension_numbers<[1], [0], [0], [1], [0, 0, 1, 1], [], []>, precision = #tpu.contract_precision<fp32>} : vector<48x128xf32>, vector<128x128xf32>, vector<48x128xf32> -> vector<48x128xf32>
    %81 = vector.extract_strided_slice %80 {offsets = [0, 0], sizes = [8, 128], strides = [1, 1]} : vector<48x128xf32> to vector<8x128xf32>
    %82 = vector.extract_strided_slice %80 {offsets = [8, 0], sizes = [8, 128], strides = [1, 1]} : vector<48x128xf32> to vector<8x128xf32>
    %83 = arith.addf %81, %82 : vector<8x128xf32>
    %84 = vector.extract_strided_slice %80 {offsets = [16, 0], sizes = [8, 128], strides = [1, 1]} : vector<48x128xf32> to vector<8x128xf32>
    %85 = arith.addf %83, %84 : vector<8x128xf32>
    %86 = vector.extract_strided_slice %80 {offsets = [24, 0], sizes = [8, 128], strides = [1, 1]} : vector<48x128xf32> to vector<8x128xf32>
    %87 = arith.addf %85, %86 : vector<8x128xf32>
    %88 = vector.extract_strided_slice %80 {offsets = [32, 0], sizes = [8, 128], strides = [1, 1]} : vector<48x128xf32> to vector<8x128xf32>
    %89 = arith.addf %87, %88 : vector<8x128xf32>
    %90 = vector.extract_strided_slice %80 {offsets = [40, 0], sizes = [8, 128], strides = [1, 1]} : vector<48x128xf32> to vector<8x128xf32>
    %91 = arith.addf %89, %90 : vector<8x128xf32>
    %cst_79 = arith.constant 0.166666672 : f32
    %92 = vector.broadcast %cst_79 : f32 to vector<8x128xf32>
    %93 = arith.mulf %91, %92 : vector<8x128xf32>
    %cst_80 = arith.constant 0.000000e+00 : f32
    %94 = vector.broadcast %cst_80 : f32 to vector<8x128xf32>
    %95 = vector.extract_strided_slice %80 {offsets = [0, 0], sizes = [8, 128], strides = [1, 1]} : vector<48x128xf32> to vector<8x128xf32>
    %96 = arith.subf %95, %93 : vector<8x128xf32>
    %97 = arith.mulf %96, %96 : vector<8x128xf32>
    %98 = arith.addf %94, %97 : vector<8x128xf32>
    %99 = vector.extract_strided_slice %80 {offsets = [8, 0], sizes = [8, 128], strides = [1, 1]} : vector<48x128xf32> to vector<8x128xf32>
    %100 = arith.subf %99, %93 : vector<8x128xf32>
    %101 = arith.mulf %100, %100 : vector<8x128xf32>
    %102 = arith.addf %98, %101 : vector<8x128xf32>
    %103 = vector.extract_strided_slice %80 {offsets = [16, 0], sizes = [8, 128], strides = [1, 1]} : vector<48x128xf32> to vector<8x128xf32>
    %104 = arith.subf %103, %93 : vector<8x128xf32>
    %105 = arith.mulf %104, %104 : vector<8x128xf32>
    %106 = arith.addf %102, %105 : vector<8x128xf32>
    %107 = vector.extract_strided_slice %80 {offsets = [24, 0], sizes = [8, 128], strides = [1, 1]} : vector<48x128xf32> to vector<8x128xf32>
    %108 = arith.subf %107, %93 : vector<8x128xf32>
    %109 = arith.mulf %108, %108 : vector<8x128xf32>
    %110 = arith.addf %106, %109 : vector<8x128xf32>
    %111 = vector.extract_strided_slice %80 {offsets = [32, 0], sizes = [8, 128], strides = [1, 1]} : vector<48x128xf32> to vector<8x128xf32>
    %112 = arith.subf %111, %93 : vector<8x128xf32>
    %113 = arith.mulf %112, %112 : vector<8x128xf32>
    %114 = arith.addf %110, %113 : vector<8x128xf32>
    %115 = vector.extract_strided_slice %80 {offsets = [40, 0], sizes = [8, 128], strides = [1, 1]} : vector<48x128xf32> to vector<8x128xf32>
    %116 = arith.subf %115, %93 : vector<8x128xf32>
    %117 = arith.mulf %116, %116 : vector<8x128xf32>
    %118 = arith.addf %114, %117 : vector<8x128xf32>
    %cst_81 = arith.constant 2.000000e-01 : f32
    %119 = vector.broadcast %cst_81 : f32 to vector<8x128xf32>
    %120 = arith.mulf %118, %119 : vector<8x128xf32>
    %cst_82 = arith.constant 0.000000e+00 : f32
    %121 = vector.broadcast %cst_82 : f32 to vector<8x128xf32>
    %122 = arith.maximumf %120, %121 : vector<8x128xf32>
    %123 = math.sqrt %122 : vector<8x128xf32>
    %cst_83 = arith.constant 1.000000e+00 : f32
    %124 = vector.broadcast %cst_83 : f32 to vector<8x128xf32>
    %125 = arith.subf %124, %123 : vector<8x128xf32>
    %126 = vector.extract_strided_slice %0 {offsets = [48, 0], sizes = [32, 128], strides = [1, 1]} : vector<96x128xf32> to vector<32x128xf32>
    %cst_84 = arith.constant dense<0.000000e+00> : vector<32x128xf32>
    %127 = tpu.matmul %126, %78, %cst_84 {dimension_numbers = #tpu.dot_dimension_numbers<[1], [0], [0], [1], [0, 0, 1, 1], [], []>, precision = #tpu.contract_precision<fp32>} : vector<32x128xf32>, vector<128x128xf32>, vector<32x128xf32> -> vector<32x128xf32>
    %128 = vector.extract_strided_slice %127 {offsets = [0, 0], sizes = [8, 128], strides = [1, 1]} : vector<32x128xf32> to vector<8x128xf32>
    %129 = vector.extract_strided_slice %127 {offsets = [8, 0], sizes = [8, 128], strides = [1, 1]} : vector<32x128xf32> to vector<8x128xf32>
    %130 = arith.addf %128, %129 : vector<8x128xf32>
    %131 = vector.extract_strided_slice %127 {offsets = [16, 0], sizes = [8, 128], strides = [1, 1]} : vector<32x128xf32> to vector<8x128xf32>
    %132 = arith.addf %130, %131 : vector<8x128xf32>
    %133 = vector.extract_strided_slice %127 {offsets = [24, 0], sizes = [8, 128], strides = [1, 1]} : vector<32x128xf32> to vector<8x128xf32>
    %134 = arith.addf %132, %133 : vector<8x128xf32>
    %cst_85 = arith.constant 2.500000e-01 : f32
    %135 = vector.broadcast %cst_85 : f32 to vector<8x128xf32>
    %136 = arith.mulf %134, %135 : vector<8x128xf32>
    %cst_86 = arith.constant 0.000000e+00 : f32
    %137 = vector.broadcast %cst_86 : f32 to vector<8x128xf32>
    %138 = vector.extract_strided_slice %127 {offsets = [0, 0], sizes = [8, 128], strides = [1, 1]} : vector<32x128xf32> to vector<8x128xf32>
    %139 = arith.subf %138, %136 : vector<8x128xf32>
    %140 = arith.mulf %139, %139 : vector<8x128xf32>
    %141 = arith.addf %137, %140 : vector<8x128xf32>
    %142 = vector.extract_strided_slice %127 {offsets = [8, 0], sizes = [8, 128], strides = [1, 1]} : vector<32x128xf32> to vector<8x128xf32>
    %143 = arith.subf %142, %136 : vector<8x128xf32>
    %144 = arith.mulf %143, %143 : vector<8x128xf32>
    %145 = arith.addf %141, %144 : vector<8x128xf32>
    %146 = vector.extract_strided_slice %127 {offsets = [16, 0], sizes = [8, 128], strides = [1, 1]} : vector<32x128xf32> to vector<8x128xf32>
    %147 = arith.subf %146, %136 : vector<8x128xf32>
    %148 = arith.mulf %147, %147 : vector<8x128xf32>
    %149 = arith.addf %145, %148 : vector<8x128xf32>
    %150 = vector.extract_strided_slice %127 {offsets = [24, 0], sizes = [8, 128], strides = [1, 1]} : vector<32x128xf32> to vector<8x128xf32>
    %151 = arith.subf %150, %136 : vector<8x128xf32>
    %152 = arith.mulf %151, %151 : vector<8x128xf32>
    %153 = arith.addf %149, %152 : vector<8x128xf32>
    %cst_87 = arith.constant 0.333333343 : f32
    %154 = vector.broadcast %cst_87 : f32 to vector<8x128xf32>
    %155 = arith.mulf %153, %154 : vector<8x128xf32>
    %cst_88 = arith.constant 0.000000e+00 : f32
    %156 = vector.broadcast %cst_88 : f32 to vector<8x128xf32>
    %157 = arith.maximumf %155, %156 : vector<8x128xf32>
    %158 = math.sqrt %157 : vector<8x128xf32>
    %cst_89 = arith.constant 1.000000e+00 : f32
    %159 = vector.broadcast %cst_89 : f32 to vector<8x128xf32>
    %160 = arith.subf %159, %158 : vector<8x128xf32>
    %161 = vector.extract_strided_slice %0 {offsets = [80, 0], sizes = [16, 128], strides = [1, 1]} : vector<96x128xf32> to vector<16x128xf32>
    %cst_90 = arith.constant dense<0.000000e+00> : vector<16x128xf32>
    %162 = tpu.matmul %161, %78, %cst_90 {dimension_numbers = #tpu.dot_dimension_numbers<[1], [0], [0], [1], [0, 0, 1, 1], [], []>, precision = #tpu.contract_precision<fp32>} : vector<16x128xf32>, vector<128x128xf32>, vector<16x128xf32> -> vector<16x128xf32>
    %163 = vector.extract_strided_slice %162 {offsets = [0, 0], sizes = [8, 128], strides = [1, 1]} : vector<16x128xf32> to vector<8x128xf32>
    %164 = vector.extract_strided_slice %162 {offsets = [8, 0], sizes = [8, 128], strides = [1, 1]} : vector<16x128xf32> to vector<8x128xf32>
    %165 = arith.addf %163, %164 : vector<8x128xf32>
    %cst_91 = arith.constant 5.000000e-01 : f32
    %166 = vector.broadcast %cst_91 : f32 to vector<8x128xf32>
    %167 = arith.mulf %165, %166 : vector<8x128xf32>
    %cst_92 = arith.constant 0.000000e+00 : f32
    %168 = vector.broadcast %cst_92 : f32 to vector<8x128xf32>
    %169 = vector.extract_strided_slice %162 {offsets = [0, 0], sizes = [8, 128], strides = [1, 1]} : vector<16x128xf32> to vector<8x128xf32>
    %170 = arith.subf %169, %167 : vector<8x128xf32>
    %171 = arith.mulf %170, %170 : vector<8x128xf32>
    %172 = arith.addf %168, %171 : vector<8x128xf32>
    %173 = vector.extract_strided_slice %162 {offsets = [8, 0], sizes = [8, 128], strides = [1, 1]} : vector<16x128xf32> to vector<8x128xf32>
    %174 = arith.subf %173, %167 : vector<8x128xf32>
    %175 = arith.mulf %174, %174 : vector<8x128xf32>
    %176 = arith.addf %172, %175 : vector<8x128xf32>
    %cst_93 = arith.constant 1.000000e+00 : f32
    %177 = vector.broadcast %cst_93 : f32 to vector<8x128xf32>
    %178 = arith.mulf %176, %177 : vector<8x128xf32>
    %cst_94 = arith.constant 0.000000e+00 : f32
    %179 = vector.broadcast %cst_94 : f32 to vector<8x128xf32>
    %180 = arith.maximumf %178, %179 : vector<8x128xf32>
    %181 = math.sqrt %180 : vector<8x128xf32>
    %cst_95 = arith.constant 1.000000e+00 : f32
    %182 = vector.broadcast %cst_95 : f32 to vector<8x128xf32>
    %183 = arith.subf %182, %181 : vector<8x128xf32>
    %184 = arith.addf %125, %160 : vector<8x128xf32>
    %185 = arith.addf %184, %183 : vector<8x128xf32>
    %cst_96 = arith.constant 0.333333343 : f32
    %186 = vector.broadcast %cst_96 : f32 to vector<8x128xf32>
    %187 = arith.mulf %185, %186 : vector<8x128xf32>
    %188 = arith.subf %125, %187 : vector<8x128xf32>
    %189 = arith.mulf %188, %188 : vector<8x128xf32>
    %190 = arith.subf %160, %187 : vector<8x128xf32>
    %191 = arith.mulf %190, %190 : vector<8x128xf32>
    %192 = arith.addf %189, %191 : vector<8x128xf32>
    %193 = arith.subf %183, %187 : vector<8x128xf32>
    %194 = arith.mulf %193, %193 : vector<8x128xf32>
    %195 = arith.addf %192, %194 : vector<8x128xf32>
    %cst_97 = arith.constant 5.000000e-01 : f32
    %196 = vector.broadcast %cst_97 : f32 to vector<8x128xf32>
    %197 = arith.mulf %195, %196 : vector<8x128xf32>
    %cst_98 = arith.constant 0.000000e+00 : f32
    %198 = vector.broadcast %cst_98 : f32 to vector<8x128xf32>
    %199 = arith.maximumf %197, %198 : vector<8x128xf32>
    %200 = math.sqrt %199 : vector<8x128xf32>
    %c0_99 = arith.constant 0 : index
    %c0_100 = arith.constant 0 : index
    %c0_101 = arith.constant 0 : index
    %201 = vector.load %arg5[%c0_99, %c0_100, %c0_101] : memref<1x8x128xf32, #tpu.memory_space<vmem>>, vector<1x8x128xf32>
    %202 = vector.shape_cast %201 : vector<1x8x128xf32> to vector<8x128xf32>
    %203 = vector.shape_cast %200 : vector<8x128xf32> to vector<1x8x128xf32>
    tpu.vector_store %arg5[%c0_99, %c0_100, %c0_101], %203 {strides = array<i32>} : memref<1x8x128xf32, #tpu.memory_space<vmem>>, vector<1x8x128xf32>,
    return
  }
  func.func @transform_0(%arg0: i32, %arg1: i32) -> (i32, i32, i32) {
    %c0_i32 = arith.constant 0 : i32
    %c0_i32_0 = arith.constant 0 : i32
    return %arg0, %c0_i32, %arg1 : i32, i32, i32
  }
  func.func @transform_1(%arg0: i32, %arg1: i32) -> (i32, i32, i32) {
    %c1_i32 = arith.constant 1 : i32
    %0 = arith.addi %arg1, %c1_i32 : i32
    %c1_i32_0 = arith.constant 1 : i32
    %1 = arith.muli %0, %c1_i32_0 : i32
    %c0_i32 = arith.constant 0 : i32
    %c0_i32_1 = arith.constant 0 : i32
    return %arg0, %c0_i32, %1 : i32, i32, i32
  }
  func.func @transform_2(%arg0: i32, %arg1: i32) -> (i32, i32) {
    %c0_i32 = arith.constant 0 : i32
    %c0_i32_0 = arith.constant 0 : i32
    %c0_i32_1 = arith.constant 0 : i32
    return %c0_i32, %c0_i32_0 : i32, i32
  }
  func.func @transform_3(%arg0: i32, %arg1: i32) -> (i32, i32, i32) {
    %c0_i32 = arith.constant 0 : i32
    %c0_i32_0 = arith.constant 0 : i32
    return %arg0, %c0_i32, %arg1 : i32, i32, i32
  }
}

</mosaic_0001>

<bundles_post_ra>
// kernel: symmetry_filter_forward.3
= control target key start
LH: loop header
LB: loop body
LE: loop exit
PB: predicated region body
PF: predicated region fallthrough
CT: control target
= control target key end

     0   :  { %s4718_s12 = smov 0   ;;  %s4720_s13 = smov 0   ;;  %s5514_s0 = inlined_call_operand.vmem [shape: f32[2,8,384], index: 0, kind: input, shape index: {}, may-alias: {0,1}]   ;;  %s5515_s1 = inlined_call_operand.vmem [shape: f32[2,8,384], index: 1, kind: input, shape index: {}, may-alias: {0,1}]   ;;  %s5516_s2 = inlined_call_operand.vmem [shape: f32[96,128], index: 2, kind: input, shape index: {}]   ;;  %s5517_s3 = inlined_call_operand.vmem [shape: f32[2,8,256], index: 3, kind: output, shape index: {}]  }
   0x1   :  { %s4722_s14 = smov 0   ;;  %s4724_s15 = smov 0  }
   0x2   :  { %s4726_s16 = smov 0  }
   0x3 LB: > { %s22_s17 = sadd.s32 1, %s4673_s14  ;;  %s25_s18 = sadd.s32 1, %s4677_s15  ;;  %s4681_s16 = sphi %s4726_s16, %s13_s16   ;;  %s4677_s15 = sphi %s4724_s15, %s5553_s15   ;;  %s4673_s14 = sphi %s4722_s14, %s5552_s14   ;;  %s4669_s13 = sphi %s4720_s13, %s5551_s13   ;;  %s4665_s12 = sphi %s4718_s12, %s5550_s12  }
   0x4   : > { %p23_p0 = scmp.ge.s32.totalorder %s22_s17, 2  ;;  %p2892_p1 = scmp.ge.s32.totalorder %s4681_s16, 1 }
   0x5   : > { %p175_p2 = scmp.lt.s32.totalorder %s4681_s16, 5 }
   0x6   : > { %s5555_s17 = smov (%p23_p0, %s22_s17), 0  ;;  %s5557_s18 = smov (!%p23_p0, %s25_s18), %s4677_s15 }
   0x7   : > { %p176_p3 = pnand %p2892_p1, %p175_p2  ;;  %p27_p4 = scmp.ge.s32.totalorder %s5557_s18, 2 }
   0x8   : > { %p214_p5 = scmp.lt.s32.totalorder (!%p176_p3), %s4669_s13, 1  ;;  %p216_p6 = scmp.lt.s32.totalorder (!%p176_p3), %s4665_s12, 2  ;;  %v240_v2 = vld [vmem:[%s5516_s2] sm:$0xff] (!%p176_p3)  ;;  %vm262_vm0 = vcmask (!%p176_p3), 1039360   ;;  %vm270_vm1 = vcmask (!%p176_p3), 1031168   ;;  %vm278_vm2 = vcmask (!%p176_p3), 1022976  }
   0x9   : > { %s5559_s18 = smov (%p27_p4, %s5557_s18), 0  ;;  %179 = sbr.rel (%p176_p3) target bundleno = 738 (0x2e2), region = 32 }
   0xa   : > { %s222_s21 = sadd.s32 (!%p176_p3), 1, %s4665_s12  ;;  %s4683_s27 = smov (!%p176_p3), 126   ;;  %v4778_v3 = vand.u32 (!%p176_p3), 4294901760, %v240_v2  ;;  %vm286_vm3 = vcmask (!%p176_p3), 916480   ;;  %vm294_vm4 = vcmask (!%p176_p3), 908288   ;;  %vm302_vm5 = vcmask (!%p176_p3), 900096  }
   0xb   : > { %p225_p7 = scmp.lt.s32.totalorder (!%p176_p3), %s222_s21, 2  ;;  %s4684_s28 = smov (!%p176_p3), 127   ;;  %vm310_vm6 = vcmask (!%p176_p3), 891904   ;;  %vm318_vm7 = vcmask (!%p176_p3), 785408   ;;  %vm326_vm8 = vcmask (!%p176_p3), 777216   ;;  %vm334_vm9 = vcmask (!%p176_p3), 769024  }
   0xc   : > { %s4685_s7 = smov (!%p176_p3), 125   ;;  %s4686_s8 = smov (!%p176_p3), 112   ;;  %v4782_v4 = vsub.f32 (!%p176_p3), %v240_v2, %v4778_v3  ;;  %vm342_vm10 = vcmask (!%p176_p3), 760832   ;;  %vm350_vm11 = vcmask (!%p176_p3), 654336   ;;  %vm358_vm12 = vcmask (!%p176_p3), 646144  }
   0xd   : > { %s4687_s9 = smov (!%p176_p3), 111   ;;  %s4688_s10 = smov (!%p176_p3), 110   ;;  %vm366_vm13 = vcmask (!%p176_p3), 637952   ;;  %vm374_vm14 = vcmask (!%p176_p3), 629760  }
   0xe   : > { %s4689_s11 = smov (!%p176_p3), 109   ;;  %s4694_s25 = smov (!%p176_p3), 80   ;;  %v459_v5 = vand.u32 (!%p176_p3), 4294901760, %v4782_v4  ;;  %3373 = vmatprep.mubr.f32.mxu0 (!%p176_p3), %v4782_v4 }
   0xf   : > { %p234_p8 = scmp.lt.s32.totalorder (!%p176_p3), %s4665_s12, 1 }
  0x10   : > { %s5561_s13 = smov (!%p214_p5, %s4669_s13), 1  ;;  %s5563_s21 = smov (!%p225_p7, %s222_s21), 2  ;;  %v460_v6 = vsub.f32 %v4782_v4, %v459_v5 }
  0x11   : > { %s217_s19 = scalar_select %p216_p6, %s4665_s12, 2 }
  0x12   : > { %s4579_s20 = smul.u32 3, %s5561_s13  ;;  %v461_v7 = vand.u32 4294901760, %v460_v6  ;;  %s5565_s12 = smov (!%p234_p8, %s4665_s12), 1 }
  0x13   : > { %s2895_s4 = sshll.u32 %s5561_s13, 1 }
  0x14   : > { %s219_s22 = sadd.s32 %s4579_s20, %s217_s19  ;;  %s228_s29 = sadd.s32 %s4579_s20, %s5563_s21  ;;  %3291 = vmatprep.mubr.f32.mxu1 %v461_v7 }
  0x15   : > { %s2893_s23 = sshll.u32 %s219_s22, 3  ;;  %s2894_s30 = sshll.u32 %s228_s29, 3 }
  0x16   : > { %s221_s26 = scalar_lea.vmem %s5514_s0, %s2893_s23  ;;  %s230_s6 = scalar_lea.vmem %s5515_s1, %s2894_s30 }
  0x17   : > { %v4759_v0 = vld [vmem:[%s221_s26] sm:$0xff]  ;;  %s4690_s19 = smov 96   ;;  %s4691_s20 = smov 95  }
  0x18   : > { %264 = vrot.lane.b32.xlu1 %v4759_v0, %s4683_s27  ;;  %255 = vrot.lane.b32.xlu0 %v4759_v0, %s4684_s28  ;;  %v253_v1 = vld [vmem:[%s230_s6] sm:$0xff]  ;;  %s4692_s21 = smov 94   ;;  %s4693_s22 = smov 93   ;;  %v377_v10 = vand.u32 4294901760, %v4759_v0 }
  0x19   : > { %s4695_s26 = smov 79   ;;  %s237_s5 = sadd.s32 %s2895_s4, %s5565_s12 }
  0x1a   : > { %v4794_v16 = vsub.f32 %v4759_v0, %v377_v10  ;;  %s2896_s6 = sshll.u32 %s237_s5, 3 }
  0x1c   : > { %267 = vrot.lane.b32.xlu1 %v253_v1, %s4683_s27  ;;  %259 = vrot.lane.b32.xlu0 %v253_v1, %s4684_s28  ;;  %s4696_s27 = smov 78   ;;  %s4697_s28 = smov 77  }
  0x20   : > { %275 = vrot.lane.b32.xlu1 %v253_v1, %s4685_s7  ;;  %272 = vrot.lane.b32.xlu0 %v4759_v0, %s4685_s7 }
  0x24   : > { %283 = vrot.lane.b32.xlu1 %v253_v1, %s4686_s8  ;;  %280 = vrot.lane.b32.xlu0 %v4759_v0, %s4686_s8 }
  0x28   : > { %291 = vrot.lane.b32.xlu1 %v253_v1, %s4687_s9  ;;  %288 = vrot.lane.b32.xlu0 %v4759_v0, %s4687_s9  ;;  %s239_s9 = scalar_lea.vmem %s5517_s3, %s2896_s6 }
  0x2c   : > { %299 = vrot.lane.b32.xlu1 %v253_v1, %s4688_s10  ;;  %296 = vrot.lane.b32.xlu0 %v4759_v0, %s4688_s10 }
  0x30   : > { %307 = vrot.lane.b32.xlu1 %v253_v1, %s4689_s11  ;;  %304 = vrot.lane.b32.xlu0 %v4759_v0, %s4689_s11 }
  0x34   : > { %315 = vrot.lane.b32.xlu1 %v253_v1, %s4690_s19  ;;  %312 = vrot.lane.b32.xlu0 %v4759_v0, %s4690_s19 }
  0x38   : > { %323 = vrot.lane.b32.xlu1 %v253_v1, %s4691_s20  ;;  %320 = vrot.lane.b32.xlu0 %v4759_v0, %s4691_s20 }
  0x3c   : > { %331 = vrot.lane.b32.xlu1 %v253_v1, %s4692_s21  ;;  %328 = vrot.lane.b32.xlu0 %v4759_v0, %s4692_s21 }
  0x40   : > { %339 = vrot.lane.b32.xlu1 %v253_v1, %s4693_s22  ;;  %336 = vrot.lane.b32.xlu0 %v4759_v0, %s4693_s22 }
  0x44   : > { %347 = vrot.lane.b32.xlu1 %v253_v1, %s4694_s25  ;;  %344 = vrot.lane.b32.xlu0 %v4759_v0, %s4694_s25 }
  0x48   : > { %355 = vrot.lane.b32.xlu1 %v253_v1, %s4695_s26  ;;  %352 = vrot.lane.b32.xlu0 %v4759_v0, %s4695_s26 }
  0x4c   : > { %363 = vrot.lane.b32.xlu1 %v253_v1, %s4696_s27  ;;  %360 = vrot.lane.b32.xlu0 %v4759_v0, %s4696_s27 }
  0x50   : > { %371 = vrot.lane.b32.xlu1 %v253_v1, %s4697_s28  ;;  %368 = vrot.lane.b32.xlu0 %v4759_v0, %s4697_s28 }
  0x8a   : > { %v265_v8 = vpop.permute.xlu1 %264  ;;  %v256_v9 = vpop.permute.xlu0 %255 }
  0x8e   : > { %v268_v11 = vpop.permute.xlu1 %267  ;;  %v260_v12 = vpop.permute.xlu0 %259 }
  0x8f   : > { %v263_v13 = vsel %vm262_vm0, %v256_v9, %v260_v12  ;;  %v271_v14 = vsel %vm270_vm1, %v265_v8, %v268_v11  ;;  %v241_v11 = vld [vmem:[%s5516_s2 + $0x8] sm:$0xff] }
  0x90   : > { %v380_v15 = vand.u32 4294901760, %v263_v13  ;;  %v383_v21 = vand.u32 4294901760, %v271_v14 }
  0x92   : > { %v4796_v17 = vpack.c.bf16 %v380_v15, %v377_v10  ;;  %v4798_v18 = vsub.f32 %v263_v13, %v380_v15  ;;  %v276_v19 = vpop.permute.xlu1 %275  ;;  %v273_v20 = vpop.permute.xlu0 %272  ;;  %v4809_v28 = vsub.f32 %v271_v14, %v383_v21 }
  0x93   : > { %v279_v22 = vsel %vm278_vm2, %v273_v20, %v276_v19 }
  0x94   : > { %v4802_v23 = vpack.c.bf16 %v4798_v18, %v4794_v16  ;;  %v386_v24 = vand.u32 4294901760, %v279_v22  ;;  %3944 = vmatprep.subr.bf16.mxu1 %v4796_v17 }
  0x95   : > { %3946 = vmatpush3.bf16.msra.mxu1 %v4796_v17 }
  0x96   : > { %v4806_v25 = vpack.c.bf16 %v386_v24, %v383_v21  ;;  %v284_v26 = vpop.permute.xlu1 %283  ;;  %v281_v27 = vpop.permute.xlu0 %280  ;;  %4008 = vmatprep.subr.bf16.mxu0 %v4802_v23  ;;  %v4811_v29 = vsub.f32 %v279_v22, %v386_v24  ;;  %v4873_v21 = vand.u32 4294901760, %v241_v11  ;;  %v242_v22 = vld [vmem:[%s5516_s2 + $0x10] sm:$0xff] }
  0x97   : > { %v287_v30 = vsel %vm286_vm3, %v281_v27, %v284_v26  ;;  %4010 = vmatpush3.bf16.msra.mxu0 %v4802_v23  ;;  %v243_v27 = vld [vmem:[%s5516_s2 + $0x18] sm:$0xff] }
  0x98   : > { %3948 = vmatprep.subr.bf16.mxu1 %v4806_v25  ;;  %v4817_v31 = vpack.c.bf16 %v4811_v29, %v4809_v28  ;;  %v389_v32 = vand.u32 4294901760, %v287_v30 }
  0x99   : > { %3950 = vmatpush3.bf16.msra.mxu1 %v4806_v25 }
  0x9a   : > { %v292_v33 = vpop.permute.xlu1 %291  ;;  %v289_v34 = vpop.permute.xlu0 %288  ;;  %4012 = vmatprep.subr.bf16.mxu0 %v4817_v31  ;;  %v4822_v37 = vsub.f32 %v287_v30, %v389_v32  ;;  %v5523_v30 = vand.u32 4294901760, %v4794_v16 }
  0x9b   : > { %v295_v35 = vsel %vm294_vm4, %v289_v34, %v292_v33  ;;  %4014 = vmatpush3.bf16.msra.mxu0 %v4817_v31 }
  0x9c   : > { %v392_v36 = vand.u32 4294901760, %v295_v35 }
  0x9e   : > { %v4824_v38 = vpack.c.bf16 %v392_v36, %v389_v32  ;;  %v4826_v39 = vsub.f32 %v295_v35, %v392_v36  ;;  %v300_v40 = vpop.permute.xlu1 %299  ;;  %v297_v41 = vpop.permute.xlu0 %296  ;;  %v4888_v32 = vand.u32 4294901760, %v242_v22  ;;  %v4892_v36 = vsub.f32 %v241_v11, %v4873_v21 }
  0x9f   : > { %v303_v42 = vsel %vm302_vm5, %v297_v41, %v300_v40  ;;  %v244_v40 = vld [vmem:[%s5516_s2 + $0x20] sm:$0xff]  ;;  %v5521_v41 = vand.u32 4294901760, %v4798_v18 }
  0xa0   : > { %v4830_v43 = vpack.c.bf16 %v4826_v39, %v4822_v37  ;;  %3952 = vmatprep.subr.bf16.mxu1 %v4824_v38  ;;  %v395_v44 = vand.u32 4294901760, %v303_v42 }
  0xa1   : > { %3954 = vmatpush3.bf16.msra.mxu1 %v4824_v38 }
  0xa2   : > { %v308_v45 = vpop.permute.xlu1 %307  ;;  %v305_v46 = vpop.permute.xlu0 %304  ;;  %4016 = vmatprep.subr.bf16.mxu0 %v4830_v43  ;;  %v4836_v49 = vsub.f32 %v303_v42, %v395_v44 }
  0xa3   : > { %v311_v47 = vsel %vm310_vm6, %v305_v46, %v308_v45  ;;  %4018 = vmatpush3.bf16.msra.mxu0 %v4830_v43  ;;  %v245_v46 = vld [vmem:[%s5516_s2 + $0x28] sm:$0xff] }
  0xa4   : > { %v398_v48 = vand.u32 4294901760, %v311_v47 }
  0xa6   : > { %v4838_v50 = vpack.c.bf16 %v398_v48, %v395_v44  ;;  %v4840_v51 = vsub.f32 %v311_v47, %v398_v48  ;;  %v316_v52 = vpop.permute.xlu1 %315  ;;  %v313_v53 = vpop.permute.xlu0 %312  ;;  %v4899_v44 = vand.u32 4294901760, %v243_v27  ;;  %v521_v47 = vsub.f32 %v4794_v16, %v5523_v30 }
  0xa7   : > { %v319_v54 = vsel %vm318_vm7, %v313_v53, %v316_v52  ;;  %v4908_v48 = vsub.f32 %v242_v22, %v4888_v32  ;;  %v4910_v52 = vand.u32 4294901760, %v244_v40 }
  0xa8   : > { %v4844_v55 = vpack.c.bf16 %v4840_v51, %v4836_v49  ;;  %3956 = vmatprep.subr.bf16.mxu1 %v4838_v50  ;;  %v401_v56 = vand.u32 4294901760, %v319_v54 }
  0xa9   : > { %3958 = vmatpush3.bf16.msra.mxu1 %v4838_v50  ;;  %v4937_v11 = vsub.f32 %v244_v40, %v4910_v52 }
  0xaa   : > { %v324_v57 = vpop.permute.xlu1 %323  ;;  %v321_v58 = vpop.permute.xlu0 %320  ;;  %4020 = vmatprep.subr.bf16.mxu0 %v4844_v55  ;;  %v4850_v61 = vsub.f32 %v319_v54, %v401_v56 }
  0xab   : > { %v327_v59 = vsel %vm326_vm8, %v321_v58, %v324_v57  ;;  %4022 = vmatpush3.bf16.msra.mxu0 %v4844_v55 }
  0xac   : > { %v404_v60 = vand.u32 4294901760, %v327_v59 }
  0xae   : > { %v4852_v62 = vpack.c.bf16 %v404_v60, %v401_v56  ;;  %v4854_v63 = vsub.f32 %v327_v59, %v404_v60  ;;  %v332_v0 = vpop.permute.xlu1 %331  ;;  %v329_v1 = vpop.permute.xlu0 %328  ;;  %v5518_v59 = vand.u32 4294901760, %v4892_v36  ;;  %v528_v60 = vsub.f32 %v4798_v18, %v5521_v41 }
  0xaf   : > { %v335_v2 = vsel %vm334_vm9, %v329_v1, %v332_v0  ;;  %v4923_v1 = vsub.f32 %v243_v27, %v4899_v44 }
  0xb0   : > { %v4858_v6 = vpack.c.bf16 %v4854_v63, %v4850_v61  ;;  %3960 = vmatprep.subr.bf16.mxu1 %v4852_v62  ;;  %v407_v7 = vand.u32 4294901760, %v335_v2  ;;  %v529_v27 = vand.u32 4294901760, %v528_v60 }
  0xb1   : > { %3962 = vmatpush3.bf16.msra.mxu1 %v4852_v62 }
  0xb2   : > { %v340_v8 = vpop.permute.xlu1 %339  ;;  %v337_v9 = vpop.permute.xlu0 %336  ;;  %4024 = vmatprep.subr.bf16.mxu0 %v4858_v6  ;;  %v4867_v13 = vsub.f32 %v335_v2, %v407_v7  ;;  %v4925_v2 = vand.u32 4294901760, %v245_v46 }
  0xb3   : > { %v343_v10 = vsel %vm342_vm10, %v337_v9, %v340_v8  ;;  %4026 = vmatpush3.bf16.msra.mxu0 %v4858_v6  ;;  %v5520_v9 = vand.u32 4294901760, %v4809_v28 }
  0xb4   : > { %v410_v12 = vand.u32 4294901760, %v343_v10 }
  0xb6   : > { %v4869_v14 = vpack.c.bf16 %v410_v12, %v407_v7  ;;  %v4871_v15 = vsub.f32 %v343_v10, %v410_v12  ;;  %v348_v19 = vpop.permute.xlu1 %347  ;;  %v345_v20 = vpop.permute.xlu0 %344  ;;  %v5519_v7 = vand.u32 4294901760, %v4811_v29  ;;  %v5522_v10 = vand.u32 4294901760, %v4908_v48 }
  0xb7   : > { %v351_v24 = vsel %vm350_vm11, %v345_v20, %v348_v19  ;;  %v522_v12 = vand.u32 4294901760, %v521_v47  ;;  %v535_v47 = vsub.f32 %v4809_v28, %v5520_v9 }
  0xb8   : > { %v4880_v26 = vpack.c.bf16 %v4871_v15, %v4867_v13  ;;  %3964 = vmatprep.subr.bf16.mxu1 %v4869_v14  ;;  %v413_v33 = vand.u32 4294901760, %v351_v24  ;;  %v542_v40 = vsub.f32 %v4811_v29, %v5519_v7 }
  0xb9   : > { %3966 = vmatpush3.bf16.msra.mxu1 %v4869_v14 }
  0xba   : > { %v356_v34 = vpop.permute.xlu1 %355  ;;  %v353_v35 = vpop.permute.xlu0 %352  ;;  %4028 = vmatprep.subr.bf16.mxu0 %v4880_v26  ;;  %v4912_v53 = vsub.f32 %v351_v24, %v413_v33  ;;  %v470_v24 = vsub.f32 %v4892_v36, %v5518_v59  ;;  %v4966_v59 = vpack.c.bf16 %v529_v27, %v522_v12  ;;  %v536_v27 = vand.u32 4294901760, %v535_v47 }
  0xbb   : > { %v359_v42 = vsel %vm358_vm12, %v353_v35, %v356_v34  ;;  %4030 = vmatpush3.bf16.msra.mxu0 %v4880_v26  ;;  %v5524_v34 = vand.u32 4294901760, %v4923_v1  ;;  %v4946_v35 = vsub.f32 %v245_v46, %v4925_v2  ;;  %v5527_v46 = vand.u32 4294901760, %v4822_v37 }
  0xbc   : > { %v416_v45 = vand.u32 4294901760, %v359_v42  ;;  %v471_v7 = vand.u32 4294901760, %v470_v24 }
  0xbd   : > { %v490_v9 = vsub.f32 %v4923_v1, %v5524_v34  ;;  %v5528_v41 = vand.u32 4294901760, %v4946_v35 }
  0xbe   : > { %v4914_v54 = vpack.c.bf16 %v416_v45, %v413_v33  ;;  %v4916_v56 = vsub.f32 %v359_v42, %v416_v45  ;;  %v364_v57 = vpop.permute.xlu1 %363  ;;  %v361_v58 = vpop.permute.xlu0 %360  ;;  %v5526_v42 = vand.u32 4294901760, %v4826_v39 }
  0xbf   : > { %v367_v0 = vsel %vm366_vm13, %v361_v58, %v364_v57  ;;  %v480_v57 = vsub.f32 %v4908_v48, %v5522_v10  ;;  %v5525_v58 = vand.u32 4294901760, %v4937_v11  ;;  %v543_v10 = vand.u32 4294901760, %v542_v40 }
  0xc0   : > { %v4930_v8 = vpack.c.bf16 %v4916_v56, %v4912_v53  ;;  %3968 = vmatprep.subr.bf16.mxu1 %v4914_v54  ;;  %v419_v19 = vand.u32 4294901760, %v367_v0  ;;  %v556_v30 = vsub.f32 %v4826_v39, %v5526_v42  ;;  %v562_v40 = vand.u32 4294901760, %v4836_v49 }
  0xc1   : > { %3970 = vmatpush3.bf16.msra.mxu1 %v4914_v54  ;;  %v481_v12 = vand.u32 4294901760, %v480_v57  ;;  %v500_v24 = vsub.f32 %v4937_v11, %v5525_v58  ;;  %v510_v57 = vsub.f32 %v4946_v35, %v5528_v41  ;;  %v4995_v34 = vpack.c.bf16 %v543_v10, %v536_v27 }
  0xc2   : > { %v372_v20 = vpop.permute.xlu1 %371  ;;  %v369_v22 = vpop.permute.xlu0 %368  ;;  %4032 = vmatprep.subr.bf16.mxu0 %v4930_v8  ;;  %v4960_v60 = vsub.f32 %v367_v0, %v419_v19  ;;  %v569_v0 = vand.u32 4294901760, %v4840_v51  ;;  %v557_v47 = vand.u32 4294901760, %v556_v30  ;;  %v5531_v42 = vand.u32 4294901760, %v4854_v63 }
  0xc3   : > { %v375_v33 = vsel %vm374_vm14, %v369_v22, %v372_v20  ;;  %4034 = vmatpush3.bf16.msra.mxu0 %v4930_v8  ;;  %v563_v10 = vsub.f32 %v4836_v49, %v562_v40  ;;  %v576_v30 = vand.u32 4294901760, %v4850_v61 }
  0xc4   : > { %v422_v45 = vand.u32 4294901760, %v375_v33  ;;  %v570_v58 = vsub.f32 %v4840_v51, %v569_v0  ;;  %v5533_v4 = vand.u32 4294901760, %v4960_v60 }
  0xc5   : > { %v564_v41 = vand.u32 4294901760, %v563_v10 }
  0xc6   : > { %v4962_v20 = vpack.c.bf16 %v422_v45, %v419_v19  ;;  %v4964_v22 = vsub.f32 %v375_v33, %v422_v45  ;;  %v549_v33 = vsub.f32 %v4822_v37, %v5527_v46  ;;  %v491_v45 = vand.u32 4294901760, %v490_v9 }
  0xc7   : > { %v501_v9 = vand.u32 4294901760, %v500_v24  ;;  %v584_v24 = vsub.f32 %v4854_v63, %v5531_v42 }
  0xc8   : > { %v4978_v19 = vpack.c.bf16 %v4964_v22, %v4960_v60  ;;  %3972 = vmatprep.subr.bf16.mxu1 %v4962_v20  ;;  %v550_v46 = vand.u32 4294901760, %v549_v33  ;;  %v5529_v33 = vand.u32 4294901760, %v4871_v15 }
  0xc9   : > { %3974 = vmatpush3.bf16.msra.mxu1 %v4962_v20 }
  0xca   : > { %3976 = vmatprep.subr.bf16.mxu1 %v4966_v59  ;;  %4036 = vmatprep.subr.bf16.mxu0 %v4978_v19  ;;  %v5011_v27 = vpack.c.bf16 %v557_v47, %v550_v46  ;;  %v5530_v46 = vand.u32 4294901760, %v4867_v13  ;;  %v598_v47 = vsub.f32 %v4871_v15, %v5529_v33  ;;  %v5532_v33 = vand.u32 4294901760, %v4964_v22 }
  0xcb   : > { %4038 = vmatpush3.bf16.msra.mxu0 %v4978_v19 }
  0xcc   : > { %4040 = vmatprep.subr.bf16.mxu0 %v4796_v17  ;;  %3292 = vmatmul.mubr.f32.vlgmr.msra.gmra.mrb[0].mxu1 %v471_v7  ;;  %v511_v7 = vand.u32 4294901760, %v510_v57  ;;  %v577_v57 = vsub.f32 %v4850_v61, %v576_v30  ;;  %v5546_v61 = vand.u32 4294901760, %v4867_v13 }
  0xcd   : > { %3978 = vmatpush3.bf16.msra.mxu1 %v4966_v59  ;;  %3294 = vmatprep.mubr.f32.mxu1 %v481_v12  ;;  %v571_v12 = vand.u32 4294901760, %v570_v58 }
  0xce   : > { %3980 = vmatprep.subr.bf16.mxu1 %v4995_v34  ;;  %3374 = vmatmul.mubr.f32.vlgmr.msra.gmra.mrb[0].mxu0 %v4892_v36  ;;  %v578_v10 = vand.u32 4294901760, %v577_v57 }
  0xcf   : > { %4042 = vmatpush3.bf16.msra.mxu0 %v4796_v17  ;;  %3376 = vmatprep.mubr.f32.mxu0 %v4908_v48  ;;  %v5027_v58 = vpack.c.bf16 %v571_v12, %v564_v41  ;;  %v591_v41 = vsub.f32 %v4867_v13, %v5530_v46  ;;  %v604_v12 = vand.u32 4294901760, %v4912_v53 }
  0xd0   : > { %4044 = vmatprep.subr.bf16.mxu0 %v4806_v25  ;;  %3295 = vmatmul.mubr.f32.gmra.mrb[2].mxu1 %v491_v45  ;;  %v585_v45 = vand.u32 4294901760, %v584_v24  ;;  %v599_v24 = vand.u32 4294901760, %v598_v47  ;;  %v626_v47 = vsub.f32 %v4964_v22, %v5532_v33 }
  0xd1   : > { %3982 = vmatpush3.bf16.msra.mxu1 %v4995_v34  ;;  %3297 = vmatprep.mubr.f32.mxu1 %v501_v9  ;;  %v611_v9 = vand.u32 4294901760, %v4916_v56  ;;  %v592_v46 = vand.u32 4294901760, %v591_v41  ;;  %v605_v42 = vsub.f32 %v4912_v53, %v604_v12  ;;  %v619_v41 = vsub.f32 %v4960_v60, %v5533_v4 }
  0xd2   : > { %3984 = vmatprep.subr.bf16.mxu1 %v5011_v27  ;;  %3377 = vmatmul.mubr.f32.gmra.mrb[2].mxu0 %v4923_v1 }
  0xd3   : > { %4046 = vmatpush3.bf16.msra.mxu0 %v4806_v25  ;;  %3379 = vmatprep.mubr.f32.mxu0 %v4937_v11  ;;  %v612_v57 = vsub.f32 %v4916_v56, %v611_v9  ;;  %v620_v33 = vand.u32 4294901760, %v619_v41  ;;  %v5203_v13 = vpack.c.bf16 %v611_v9, %v604_v12  ;;  %v5548_v56 = vand.u32 4294901760, %v4960_v60 }
  0xd4   : > { %4048 = vmatprep.subr.bf16.mxu0 %v4824_v38  ;;  %3298 = vmatmul.mubr.f32.gmra.mrb[4].mxu1 %v511_v7  ;;  %v5045_v7 = vpack.c.bf16 %v585_v45, %v578_v10  ;;  %v606_v10 = vand.u32 4294901760, %v605_v42  ;;  %v5549_v9 = vand.u32 4294901760, %v4964_v22 }
  0xd5   : > { %3986 = vmatpush3.bf16.msra.mxu1 %v5011_v27  ;;  %3332 = vmatprep.mubr.f32.mxu1 %v4778_v3  ;;  %v613_v45 = vand.u32 4294901760, %v612_v57  ;;  %v627_v57 = vand.u32 4294901760, %v626_v47 }
  0xd6   : > { %3988 = vmatprep.subr.bf16.mxu1 %v5027_v58  ;;  %3380 = vmatmul.mubr.f32.gmra.mrb[4].mxu0 %v4946_v35  ;;  %v5220_v12 = vpack.c.bf16 %v5549_v9, %v5548_v56 }
  0xd7   : > { %4050 = vmatpush3.bf16.msra.mxu0 %v4824_v38  ;;  %3414 = vmatprep.mubr.f32.mxu0 %v459_v5  ;;  %v5059_v5 = vpack.c.bf16 %v599_v24, %v592_v46  ;;  %v246_v46 = vld [vmem:[%s5516_s2 + $0x30] sm:$0xff]  ;;  %v5074_v24 = vpack.c.bf16 %v613_v45, %v606_v10  ;;  %v5082_v4 = vpack.c.bf16 %v627_v57, %v620_v33  ;;  %v5534_v33 = vand.u32 4294901760, %v4794_v16 }
  0xd8   : > { %4052 = vmatprep.subr.bf16.mxu0 %v4838_v50  ;;  %v5078_v42 = vand.u32 4294901760, %v246_v46  ;;  %v5535_v10 = vand.u32 4294901760, %v4798_v18  ;;  %v5536_v18 = vand.u32 4294901760, %v4809_v28 }
  0xd9   : > { %3990 = vmatpush3.bf16.msra.mxu1 %v5027_v58 }
  0xda   : > { %3992 = vmatprep.subr.bf16.mxu1 %v5045_v7  ;;  %v5087_v45 = vsub.f32 %v246_v46, %v5078_v42  ;;  %v5098_v41 = vpack.c.bf16 %v5535_v10, %v5534_v33  ;;  %v5537_v46 = vand.u32 4294901760, %v4811_v29  ;;  %v5538_v33 = vand.u32 4294901760, %v4892_v36 }
  0xdb   : > { %4054 = vmatpush3.bf16.msra.mxu0 %v4838_v50  ;;  %v5539_v10 = vand.u32 4294901760, %v4908_v48  ;;  %v5540_v29 = vand.u32 4294901760, %v4822_v37  ;;  %v5542_v48 = vand.u32 4294901760, %v4923_v1  ;;  %v247_v37 = vld [vmem:[%s5516_s2 + $0x38] sm:$0xff]  ;;  %v5544_v1 = vand.u32 4294901760, %v4946_v35  ;;  %v249_v35 = vld [vmem:[%s5516_s2 + $0x48] sm:$0xff] }
  0xdc   : > { %4056 = vmatprep.subr.bf16.mxu0 %v4852_v62  ;;  %v1349_v47 = vand.u32 4294901760, %v5087_v45  ;;  %v5113_v57 = vpack.c.bf16 %v5537_v46, %v5536_v18  ;;  %v5541_v18 = vand.u32 4294901760, %v4826_v39  ;;  %v5543_v46 = vand.u32 4294901760, %v4937_v11  ;;  %v248_v11 = vld [vmem:[%s5516_s2 + $0x40] sm:$0xff] }
  0xdd   : > { %3994 = vmatpush3.bf16.msra.mxu1 %v5045_v7  ;;  %v5147_v39 = vpack.c.bf16 %v569_v0, %v562_v40  ;;  %v5158_v49 = vand.u32 4294901760, %v247_v37  ;;  %v5161_v51 = vand.u32 4294901760, %v248_v11  ;;  %v5545_v0 = vand.u32 4294901760, %v4854_v63 }
  0xde   : > { %3996 = vmatprep.subr.bf16.mxu1 %v5059_v5  ;;  %v1350_v16 = vsub.f32 %v5087_v45, %v1349_v47  ;;  %v5129_v36 = vpack.c.bf16 %v5541_v18, %v5540_v29  ;;  %v5547_v63 = vand.u32 4294901760, %v4871_v15 }
  0xdf   : > { %4058 = vmatpush3.bf16.msra.mxu0 %v4852_v62  ;;  %v5170_v40 = vpack.c.bf16 %v5545_v0, %v576_v30 }
  0xe0   : > { %4060 = vmatprep.subr.bf16.mxu0 %v4869_v14  ;;  %v1351_v28 = vand.u32 4294901760, %v1350_v16  ;;  %v5176_v16 = vsub.f32 %v247_v37, %v5158_v49  ;;  %v5188_v30 = vpack.c.bf16 %v5547_v63, %v5546_v61 }
  0xe1   : > { %3998 = vmatpush3.bf16.msra.mxu1 %v5059_v5 }
  0xe2   : > { %4000 = vmatprep.subr.bf16.mxu1 %v5074_v24 }
  0xe3   : > { %4062 = vmatpush3.bf16.msra.mxu0 %v4869_v14 }
  0xe4   : > { %4064 = vmatprep.subr.bf16.mxu0 %v4914_v54 }
  0xe5   : > { %4002 = vmatpush3.bf16.msra.mxu1 %v5074_v24 }
  0xe6   : > { %4004 = vmatprep.subr.bf16.mxu1 %v5082_v4 }
  0xe7   : > { %4066 = vmatpush3.bf16.msra.mxu0 %v4914_v54 }
  0xe8   : > { %4068 = vmatprep.subr.bf16.mxu0 %v4962_v20 }
  0xe9   : > { %4006 = vmatpush3.bf16.msra.mxu1 %v5082_v4 }
  0xea   : > { %4136 = vmatprep.subr.bf16.mxu1 %v4796_v17 }
  0xeb   : > { %4070 = vmatpush3.bf16.msra.mxu0 %v4962_v20 }
  0xec   : > { %3333 = vmatmul.mubr.f32.vlgmr.msra.gmra.mrb[0].mxu1 %v4873_v21  ;;  %4072 = vmatprep.subr.bf16.mxu0 %v5098_v41 }
  0xed   : > { %4138 = vmatpush3.bf16.msra.mxu1 %v4796_v17  ;;  %3335 = vmatprep.mubr.f32.mxu1 %v4888_v32 }
  0xee   : > { %4140 = vmatprep.subr.bf16.mxu1 %v4806_v25  ;;  %3415 = vmatmul.mubr.f32.vlgmr.msra.gmra.mrb[0].mxu0 %v5538_v33  ;;  %v5178_v33 = vand.u32 4294901760, %v249_v35 }
  0xef   : > { %4074 = vmatpush3.bf16.msra.mxu0 %v5098_v41  ;;  %3417 = vmatprep.mubr.f32.mxu0 %v5539_v10  ;;  %v5182_v10 = vsub.f32 %v248_v11, %v5161_v51 }
  0xf0   : > { %3336 = vmatmul.mubr.f32.gmra.mrb[2].mxu1 %v4899_v44  ;;  %4076 = vmatprep.subr.bf16.mxu0 %v5113_v57  ;;  %v5195_v29 = vsub.f32 %v249_v35, %v5178_v33 }
  0xf1   : > { %4142 = vmatpush3.bf16.msra.mxu1 %v4806_v25  ;;  %3338 = vmatprep.mubr.f32.mxu1 %v4910_v52  ;;  %v1369_v18 = vand.u32 4294901760, %v5182_v10 }
  0xf2   : > { %4144 = vmatprep.subr.bf16.mxu1 %v4824_v38  ;;  %3418 = vmatmul.mubr.f32.gmra.mrb[2].mxu0 %v5542_v48  ;;  %v1379_v48 = vand.u32 4294901760, %v5195_v29 }
  0xf3   : > { %4078 = vmatpush3.bf16.msra.mxu0 %v5113_v57  ;;  %3420 = vmatprep.mubr.f32.mxu0 %v5543_v46  ;;  %v1370_v53 = vsub.f32 %v5182_v10, %v1369_v18 }
  0xf4   : > { %3339 = vmatmul.mubr.f32.gmra.mrb[4].mxu1 %v4925_v2  ;;  %4080 = vmatprep.subr.bf16.mxu0 %v5129_v36  ;;  %v1380_v37 = vsub.f32 %v5195_v29, %v1379_v48 }
  0xf5   : > { %4146 = vmatpush3.bf16.msra.mxu1 %v4824_v38  ;;  %3537 = vmatprep.mubr.f32.mxu1 %v1351_v28  ;;  %v1359_v28 = vand.u32 4294901760, %v5176_v16 }
  0xf6   : > { %4148 = vmatprep.subr.bf16.mxu1 %v4838_v50  ;;  %3421 = vmatmul.mubr.f32.gmra.mrb[4].mxu0 %v5544_v1  ;;  %v1371_v1 = vand.u32 4294901760, %v1370_v53  ;;  %v1381_v60 = vand.u32 4294901760, %v1380_v37 }
  0xf7   : > { %4082 = vmatpush3.bf16.msra.mxu0 %v5129_v36  ;;  %3455 = vmatprep.mubr.f32.mxu0 %v4778_v3  ;;  %v1360_v15 = vsub.f32 %v5176_v16, %v1359_v28 }
  0xf8   : > { %4084 = vmatprep.subr.bf16.mxu0 %v5147_v39 }
  0xf9   : > { %4150 = vmatpush3.bf16.msra.mxu1 %v4838_v50  ;;  %v1361_v46 = vand.u32 4294901760, %v1360_v15 }
  0xfa   : > { %4152 = vmatprep.subr.bf16.mxu1 %v4852_v62 }
  0xfb   : > { %4086 = vmatpush3.bf16.msra.mxu0 %v5147_v39 }
  0xfc   : > { %4088 = vmatprep.subr.bf16.mxu0 %v5170_v40 }
  0xfd   : > { %4154 = vmatpush3.bf16.msra.mxu1 %v4852_v62 }
  0xfe   : > { %4156 = vmatprep.subr.bf16.mxu1 %v4869_v14 }
  0xff   : > { %4090 = vmatpush3.bf16.msra.mxu0 %v5170_v40 }
 0x100   : > { %4092 = vmatprep.subr.bf16.mxu0 %v5188_v30 }
 0x101   : > { %4158 = vmatpush3.bf16.msra.mxu1 %v4869_v14 }
 0x102   : > { %4160 = vmatprep.subr.bf16.mxu1 %v4914_v54 }
 0x103   : > { %4094 = vmatpush3.bf16.msra.mxu0 %v5188_v30 }
 0x104   : > { %4096 = vmatprep.subr.bf16.mxu0 %v5203_v13 }
 0x105   : > { %4162 = vmatpush3.bf16.msra.mxu1 %v4914_v54 }
 0x106   : > { %4164 = vmatprep.subr.bf16.mxu1 %v4962_v20 }
 0x107   : > { %4098 = vmatpush3.bf16.msra.mxu0 %v5203_v13 }
 0x108   : > { %4100 = vmatprep.subr.bf16.mxu0 %v5220_v12 }
 0x109   : > { %4166 = vmatpush3.bf16.msra.mxu1 %v4962_v20 }
 0x10a   : > { %4168 = vmatprep.subr.bf16.mxu1 %v4966_v59 }
 0x10b   : > { %4102 = vmatpush3.bf16.msra.mxu0 %v5220_v12 }
 0x10c   : > { %4104 = vmatprep.subr.bf16.mxu0 %v4796_v17  ;;  %3538 = vmatmul.mubr.f32.vlgmr.msra.gmra.mrb[6].mxu1 %v1361_v46 }
 0x10d   : > { %4170 = vmatpush3.bf16.msra.mxu1 %v4966_v59  ;;  %3540 = vmatprep.mubr.f32.mxu1 %v1371_v1 }
 0x10e   : > { %4172 = vmatprep.subr.bf16.mxu1 %v4995_v34  ;;  %3456 = vmatmul.mubr.f32.vlgmr.msra.gmra.mrb[0].mxu0 %v4873_v21 }
 0x10f   : > { %4106 = vmatpush3.bf16.msra.mxu0 %v4796_v17  ;;  %3458 = vmatprep.mubr.f32.mxu0 %v4888_v32 }
 0x110   : > { %4108 = vmatprep.subr.bf16.mxu0 %v4806_v25  ;;  %3541 = vmatmul.mubr.f32.gmra.mrb[8].mxu1 %v1381_v60 }
 0x111   : > { %4174 = vmatpush3.bf16.msra.mxu1 %v4995_v34  ;;  %3575 = vmatprep.mubr.f32.mxu1 %v5078_v42 }
 0x112   : > { %4176 = vmatprep.subr.bf16.mxu1 %v5011_v27  ;;  %3459 = vmatmul.mubr.f32.gmra.mrb[2].mxu0 %v4899_v44 }
 0x113   : > { %4110 = vmatpush3.bf16.msra.mxu0 %v4806_v25  ;;  %3461 = vmatprep.mubr.f32.mxu0 %v4910_v52 }
 0x114   : > { %4112 = vmatprep.subr.bf16.mxu0 %v4824_v38 }
 0x115   : > { %4178 = vmatpush3.bf16.msra.mxu1 %v5011_v27 }
 0x116   : > { %4180 = vmatprep.subr.bf16.mxu1 %v5027_v58  ;;  %3462 = vmatmul.mubr.f32.gmra.mrb[4].mxu0 %v4925_v2 }
 0x117   : > { %4114 = vmatpush3.bf16.msra.mxu0 %v4824_v38  ;;  %3496 = vmatprep.mubr.f32.mxu0 %v4778_v3  ;;  %v250_v3 = vld [vmem:[%s5516_s2 + $0x50] sm:$0xff] }
 0x118   : > { %4116 = vmatprep.subr.bf16.mxu0 %v4838_v50 }
 0x119   : > { %4182 = vmatpush3.bf16.msra.mxu1 %v5027_v58 }
 0x11a   : > { %4184 = vmatprep.subr.bf16.mxu1 %v5045_v7 }
 0x11b   : > { %4118 = vmatpush3.bf16.msra.mxu0 %v4838_v50 }
 0x11c   : > { %4120 = vmatprep.subr.bf16.mxu0 %v4852_v62 }
 0x11d   : > { %4186 = vmatpush3.bf16.msra.mxu1 %v5045_v7 }
 0x11e   : > { %4188 = vmatprep.subr.bf16.mxu1 %v5059_v5 }
 0x11f   : > { %4122 = vmatpush3.bf16.msra.mxu0 %v4852_v62 }
 0x120   : > { %4124 = vmatprep.subr.bf16.mxu0 %v4869_v14 }
 0x121   : > { %4190 = vmatpush3.bf16.msra.mxu1 %v5059_v5 }
 0x122   : > { %4192 = vmatprep.subr.bf16.mxu1 %v5074_v24 }
 0x123   : > { %4126 = vmatpush3.bf16.msra.mxu0 %v4869_v14 }
 0x124   : > { %4128 = vmatprep.subr.bf16.mxu0 %v4914_v54 }
 0x125   : > { %4194 = vmatpush3.bf16.msra.mxu1 %v5074_v24 }
 0x126   : > { %4196 = vmatprep.subr.bf16.mxu1 %v5082_v4 }
 0x127   : > { %4130 = vmatpush3.bf16.msra.mxu0 %v4914_v54 }
 0x128   : > { %4132 = vmatprep.subr.bf16.mxu0 %v4962_v20 }
 0x129   : > { %4198 = vmatpush3.bf16.msra.mxu1 %v5082_v4 }
 0x12a   : > { %4200 = vmatprep.subr.bf16.mxu1 %v4802_v23 }
 0x12b   : > { %4134 = vmatpush3.bf16.msra.mxu0 %v4962_v20 }
 0x12c   : > { %4360 = vmatprep.subr.bf16.mxu0 %v4966_v59  ;;  %3576 = vmatmul.mubr.f32.vlgmr.msra.gmra.mrb[6].mxu1 %v5158_v49 }
 0x12d   : > { %4202 = vmatpush3.bf16.msra.mxu1 %v4802_v23  ;;  %3578 = vmatprep.mubr.f32.mxu1 %v5161_v51 }
 0x12e   : > { %3497 = vmatmul.mubr.f32.vlgmr.msra.gmra.mrb[0].mxu0 %v4873_v21  ;;  %4204 = vmatprep.subr.bf16.mxu1 %v4817_v31  ;;  %v5289_v21 = vand.u32 4294901760, %v250_v3 }
 0x12f   : > { %4362 = vmatpush3.bf16.msra.mxu0 %v4966_v59  ;;  %3499 = vmatprep.mubr.f32.mxu0 %v4888_v32  ;;  %v251_v32 = vld [vmem:[%s5516_s2 + $0x58] sm:$0xff] }
 0x130   : > { %4364 = vmatprep.subr.bf16.mxu0 %v4995_v34  ;;  %3579 = vmatmul.mubr.f32.gmra.mrb[8].mxu1 %v5178_v33 }
 0x131   : > { %4206 = vmatpush3.bf16.msra.mxu1 %v4817_v31  ;;  %3613 = vmatprep.mubr.f32.mxu1 %v5087_v45 }
 0x132   : > { %3500 = vmatmul.mubr.f32.gmra.mrb[2].mxu0 %v4899_v44  ;;  %4208 = vmatprep.subr.bf16.mxu1 %v4830_v43  ;;  %v5319_v44 = vand.u32 4294901760, %v251_v32 }
 0x133   : > { %4366 = vmatpush3.bf16.msra.mxu0 %v4995_v34  ;;  %3502 = vmatprep.mubr.f32.mxu0 %v4910_v52  ;;  %v5323_v52 = vsub.f32 %v250_v3, %v5289_v21 }
 0x134   : > { %4368 = vmatprep.subr.bf16.mxu0 %v5011_v27 }
 0x135   : > { %4210 = vmatpush3.bf16.msra.mxu1 %v4830_v43 }
 0x136   : > { %3503 = vmatmul.mubr.f32.gmra.mrb[4].mxu0 %v4925_v2  ;;  %4212 = vmatprep.subr.bf16.mxu1 %v4844_v55 }
 0x137   : > { %4370 = vmatpush3.bf16.msra.mxu0 %v5011_v27  ;;  %3800 = vmatprep.mubr.f32.mxu0 %v5289_v21 }
 0x138   : > { %4372 = vmatprep.subr.bf16.mxu0 %v5027_v58 }
 0x139   : > { %4214 = vmatpush3.bf16.msra.mxu1 %v4844_v55 }
 0x13a   : > { %4216 = vmatprep.subr.bf16.mxu1 %v4858_v6 }
 0x13b   : > { %4374 = vmatpush3.bf16.msra.mxu0 %v5027_v58 }
 0x13c   : > { %4376 = vmatprep.subr.bf16.mxu0 %v5045_v7 }
 0x13d   : > { %4218 = vmatpush3.bf16.msra.mxu1 %v4858_v6 }
 0x13e   : > { %4220 = vmatprep.subr.bf16.mxu1 %v4880_v26 }
 0x13f   : > { %4378 = vmatpush3.bf16.msra.mxu0 %v5045_v7 }
 0x140   : > { %4380 = vmatprep.subr.bf16.mxu0 %v5059_v5 }
 0x141   : > { %4222 = vmatpush3.bf16.msra.mxu1 %v4880_v26 }
 0x142   : > { %4224 = vmatprep.subr.bf16.mxu1 %v4930_v8 }
 0x143   : > { %4382 = vmatpush3.bf16.msra.mxu0 %v5059_v5 }
 0x144   : > { %4384 = vmatprep.subr.bf16.mxu0 %v5074_v24 }
 0x145   : > { %4226 = vmatpush3.bf16.msra.mxu1 %v4930_v8 }
 0x146   : > { %4228 = vmatprep.subr.bf16.mxu1 %v4978_v19 }
 0x147   : > { %4386 = vmatpush3.bf16.msra.mxu0 %v5074_v24 }
 0x148   : > { %4388 = vmatprep.subr.bf16.mxu0 %v5082_v4 }
 0x149   : > { %4230 = vmatpush3.bf16.msra.mxu1 %v4978_v19 }
 0x14a   : > { %4232 = vmatprep.subr.bf16.mxu1 %v4796_v17 }
 0x14b   : > { %4390 = vmatpush3.bf16.msra.mxu0 %v5082_v4 }
 0x14c   : > { %4392 = vmatprep.subr.bf16.mxu0 %v4802_v23  ;;  %3614 = vmatmul.mubr.f32.vlgmr.msra.gmra.mrb[6].mxu1 %v5176_v16 }
 0x14d   : > { %4234 = vmatpush3.bf16.msra.mxu1 %v4796_v17  ;;  %3616 = vmatprep.mubr.f32.mxu1 %v5182_v10 }
 0x14e   : > { %4236 = vmatprep.subr.bf16.mxu1 %v4806_v25  ;;  %3801 = vmatmul.mubr.f32.vlgmr.msra.gmra.mrb[6].mxu0 %v5319_v44 }
 0x14f   : > { %4394 = vmatpush3.bf16.msra.mxu0 %v4802_v23  ;;  %3835 = vmatprep.mubr.f32.mxu0 %v5323_v52  ;;  %v5364_v23 = vsub.f32 %v251_v32, %v5319_v44 }
 0x150   : > { %4396 = vmatprep.subr.bf16.mxu0 %v4817_v31  ;;  %3617 = vmatmul.mubr.f32.gmra.mrb[8].mxu1 %v5195_v29 }
 0x151   : > { %4238 = vmatpush3.bf16.msra.mxu1 %v4806_v25  ;;  %3651 = vmatprep.mubr.f32.mxu1 %v1349_v47 }
 0x152   : > { %4240 = vmatprep.subr.bf16.mxu1 %v4824_v38 }
 0x153   : > { %4398 = vmatpush3.bf16.msra.mxu0 %v4817_v31  ;;  %v2145_v31 = vand.u32 4294901760, %v5323_v52 }
 0x154   : > { %4400 = vmatprep.subr.bf16.mxu0 %v4830_v43 }
 0x155   : > { %4242 = vmatpush3.bf16.msra.mxu1 %v4824_v38 }
 0x156   : > { %4244 = vmatprep.subr.bf16.mxu1 %v4838_v50 }
 0x157   : > { %4402 = vmatpush3.bf16.msra.mxu0 %v4830_v43  ;;  %v2155_v43 = vand.u32 4294901760, %v5364_v23 }
 0x158   : > { %4404 = vmatprep.subr.bf16.mxu0 %v4844_v55 }
 0x159   : > { %4246 = vmatpush3.bf16.msra.mxu1 %v4838_v50 }
 0x15a   : > { %4248 = vmatprep.subr.bf16.mxu1 %v4852_v62 }
 0x15b   : > { %4406 = vmatpush3.bf16.msra.mxu0 %v4844_v55  ;;  %v2146_v55 = vsub.f32 %v5323_v52, %v2145_v31 }
 0x15c   : > { %4408 = vmatprep.subr.bf16.mxu0 %v4858_v6 }
 0x15d   : > { %4250 = vmatpush3.bf16.msra.mxu1 %v4852_v62 }
 0x15e   : > { %4252 = vmatprep.subr.bf16.mxu1 %v4869_v14 }
 0x15f   : > { %4410 = vmatpush3.bf16.msra.mxu0 %v4858_v6  ;;  %v2147_v6 = vand.u32 4294901760, %v2146_v55 }
 0x160   : > { %4412 = vmatprep.subr.bf16.mxu0 %v4880_v26 }
 0x161   : > { %4254 = vmatpush3.bf16.msra.mxu1 %v4869_v14 }
 0x162   : > { %4256 = vmatprep.subr.bf16.mxu1 %v4914_v54 }
 0x163   : > { %4414 = vmatpush3.bf16.msra.mxu0 %v4880_v26 }
 0x164   : > { %4416 = vmatprep.subr.bf16.mxu0 %v4930_v8 }
 0x165   : > { %4258 = vmatpush3.bf16.msra.mxu1 %v4914_v54 }
 0x166   : > { %4260 = vmatprep.subr.bf16.mxu1 %v4962_v20 }
 0x167   : > { %4418 = vmatpush3.bf16.msra.mxu0 %v4930_v8 }
 0x168   : > { %4420 = vmatprep.subr.bf16.mxu0 %v4978_v19 }
 0x169   : > { %4262 = vmatpush3.bf16.msra.mxu1 %v4962_v20 }
 0x16a   : > { %4264 = vmatprep.subr.bf16.mxu1 %v5098_v41 }
 0x16b   : > { %4422 = vmatpush3.bf16.msra.mxu0 %v4978_v19 }
 0x16c   : > { %4424 = vmatprep.subr.bf16.mxu0 %v4796_v17  ;;  %3652 = vmatmul.mubr.f32.vlgmr.msra.gmra.mrb[6].mxu1 %v1359_v28 }
 0x16d   : > { %4266 = vmatpush3.bf16.msra.mxu1 %v5098_v41  ;;  %3654 = vmatprep.mubr.f32.mxu1 %v1369_v18 }
 0x16e   : > { %4268 = vmatprep.subr.bf16.mxu1 %v5113_v57  ;;  %3836 = vmatmul.mubr.f32.vlgmr.msra.gmra.mrb[6].mxu0 %v5364_v23 }
 0x16f   : > { %4426 = vmatpush3.bf16.msra.mxu0 %v4796_v17  ;;  %3870 = vmatprep.mubr.f32.mxu0 %v2145_v31 }
 0x170   : > { %4428 = vmatprep.subr.bf16.mxu0 %v4806_v25  ;;  %3655 = vmatmul.mubr.f32.gmra.mrb[8].mxu1 %v1379_v48 }
 0x171   : > { %4270 = vmatpush3.bf16.msra.mxu1 %v5113_v57  ;;  %3689 = vmatprep.mubr.f32.mxu1 %v5078_v42 }
 0x172   : > { %4272 = vmatprep.subr.bf16.mxu1 %v5129_v36 }
 0x173   : > { %4430 = vmatpush3.bf16.msra.mxu0 %v4806_v25 }
 0x174   : > { %4432 = vmatprep.subr.bf16.mxu0 %v4824_v38 }
 0x175   : > { %4274 = vmatpush3.bf16.msra.mxu1 %v5129_v36 }
 0x176   : > { %4276 = vmatprep.subr.bf16.mxu1 %v5147_v39 }
 0x177   : > { %4434 = vmatpush3.bf16.msra.mxu0 %v4824_v38 }
 0x178   : > { %4436 = vmatprep.subr.bf16.mxu0 %v4838_v50 }
 0x179   : > { %4278 = vmatpush3.bf16.msra.mxu1 %v5147_v39 }
 0x17a   : > { %4280 = vmatprep.subr.bf16.mxu1 %v5170_v40 }
 0x17b   : > { %4438 = vmatpush3.bf16.msra.mxu0 %v4838_v50 }
 0x17c   : > { %4440 = vmatprep.subr.bf16.mxu0 %v4852_v62 }
 0x17d   : > { %4282 = vmatpush3.bf16.msra.mxu1 %v5170_v40 }
 0x17e   : > { %4284 = vmatprep.subr.bf16.mxu1 %v5188_v30 }
 0x17f   : > { %4442 = vmatpush3.bf16.msra.mxu0 %v4852_v62 }
 0x180   : > { %4444 = vmatprep.subr.bf16.mxu0 %v4869_v14 }
 0x181   : > { %4286 = vmatpush3.bf16.msra.mxu1 %v5188_v30 }
 0x182   : > { %4288 = vmatprep.subr.bf16.mxu1 %v5203_v13 }
 0x183   : > { %4446 = vmatpush3.bf16.msra.mxu0 %v4869_v14 }
 0x184   : > { %4448 = vmatprep.subr.bf16.mxu0 %v4914_v54 }
 0x185   : > { %4290 = vmatpush3.bf16.msra.mxu1 %v5203_v13 }
 0x186   : > { %4292 = vmatprep.subr.bf16.mxu1 %v5220_v12 }
 0x187   : > { %4450 = vmatpush3.bf16.msra.mxu0 %v4914_v54 }
 0x188   : > { %4452 = vmatprep.subr.bf16.mxu0 %v4962_v20 }
 0x189   : > { %4294 = vmatpush3.bf16.msra.mxu1 %v5220_v12 }
 0x18a   : > { %4296 = vmatprep.subr.bf16.mxu1 %v4796_v17 }
 0x18b   : > { %4454 = vmatpush3.bf16.msra.mxu0 %v4962_v20 }
 0x18c   : > { %4456 = vmatprep.subr.bf16.mxu0 %v5098_v41  ;;  %3690 = vmatmul.mubr.f32.vlgmr.msra.gmra.mrb[6].mxu1 %v5158_v49 }
 0x18d   : > { %4298 = vmatpush3.bf16.msra.mxu1 %v4796_v17  ;;  %3692 = vmatprep.mubr.f32.mxu1 %v5161_v51 }
 0x18e   : > { %4300 = vmatprep.subr.bf16.mxu1 %v4806_v25  ;;  %3871 = vmatmul.mubr.f32.vlgmr.msra.gmra.mrb[6].mxu0 %v2155_v43 }
 0x18f   : > { %4458 = vmatpush3.bf16.msra.mxu0 %v5098_v41  ;;  %3905 = vmatprep.mubr.f32.mxu0 %v5289_v21 }
 0x190   : > { %4460 = vmatprep.subr.bf16.mxu0 %v5113_v57  ;;  %3693 = vmatmul.mubr.f32.gmra.mrb[8].mxu1 %v5178_v33 }
 0x191   : > { %4302 = vmatpush3.bf16.msra.mxu1 %v4806_v25  ;;  %3727 = vmatprep.mubr.f32.mxu1 %v5078_v42 }
 0x192   : > { %4304 = vmatprep.subr.bf16.mxu1 %v4824_v38 }
 0x193   : > { %4462 = vmatpush3.bf16.msra.mxu0 %v5113_v57 }
 0x194   : > { %4464 = vmatprep.subr.bf16.mxu0 %v5129_v36 }
 0x195   : > { %4306 = vmatpush3.bf16.msra.mxu1 %v4824_v38 }
 0x196   : > { %4308 = vmatprep.subr.bf16.mxu1 %v4838_v50 }
 0x197   : > { %4466 = vmatpush3.bf16.msra.mxu0 %v5129_v36 }
 0x198   : > { %4468 = vmatprep.subr.bf16.mxu0 %v5147_v39 }
 0x199   : > { %4310 = vmatpush3.bf16.msra.mxu1 %v4838_v50 }
 0x19a   : > { %4312 = vmatprep.subr.bf16.mxu1 %v4852_v62 }
 0x19b   : > { %4470 = vmatpush3.bf16.msra.mxu0 %v5147_v39 }
 0x19c   : > { %4472 = vmatprep.subr.bf16.mxu0 %v5170_v40 }
 0x19d   : > { %4314 = vmatpush3.bf16.msra.mxu1 %v4852_v62 }
 0x19e   : > { %4316 = vmatprep.subr.bf16.mxu1 %v4869_v14 }
 0x19f   : > { %4474 = vmatpush3.bf16.msra.mxu0 %v5170_v40 }
 0x1a0   : > { %4476 = vmatprep.subr.bf16.mxu0 %v5188_v30 }
 0x1a1   : > { %4318 = vmatpush3.bf16.msra.mxu1 %v4869_v14 }
 0x1a2   : > { %4320 = vmatprep.subr.bf16.mxu1 %v4914_v54 }
 0x1a3   : > { %4478 = vmatpush3.bf16.msra.mxu0 %v5188_v30 }
 0x1a4   : > { %4480 = vmatprep.subr.bf16.mxu0 %v5203_v13 }
 0x1a5   : > { %4322 = vmatpush3.bf16.msra.mxu1 %v4914_v54 }
 0x1a6   : > { %4324 = vmatprep.subr.bf16.mxu1 %v4962_v20 }
 0x1a7   : > { %4482 = vmatpush3.bf16.msra.mxu0 %v5203_v13 }
 0x1a8   : > { %4484 = vmatprep.subr.bf16.mxu0 %v5220_v12 }
 0x1a9   : > { %4326 = vmatpush3.bf16.msra.mxu1 %v4962_v20 }
 0x1aa   : > { %4328 = vmatprep.subr.bf16.mxu1 %v4796_v17 }
 0x1ab   : > { %4486 = vmatpush3.bf16.msra.mxu0 %v5220_v12 }
 0x1ac   : > { %3728 = vmatmul.mubr.f32.vlgmr.msra.gmra.mrb[6].mxu1 %v5158_v49  ;;  %4488 = vmatprep.subr.bf16.mxu0 %v4796_v17 }
 0x1ad   : > { %4330 = vmatpush3.bf16.msra.mxu1 %v4796_v17  ;;  %3730 = vmatprep.mubr.f32.mxu1 %v5161_v51 }
 0x1ae   : > { %4332 = vmatprep.subr.bf16.mxu1 %v4806_v25  ;;  %3906 = vmatmul.mubr.f32.vlgmr.msra.gmra.mrb[6].mxu0 %v5319_v44 }
 0x1af   : > { %4490 = vmatpush3.bf16.msra.mxu0 %v4796_v17  ;;  %3940 = vmatprep.mubr.f32.mxu0 %v5289_v21 }
 0x1b0   : > { %3731 = vmatmul.mubr.f32.gmra.mrb[8].mxu1 %v5178_v33  ;;  %4492 = vmatprep.subr.bf16.mxu0 %v4806_v25 }
 0x1b1   : > { %4334 = vmatpush3.bf16.msra.mxu1 %v4806_v25  ;;  %3765 = vmatprep.mubr.f32.mxu1 %v2147_v6 }
 0x1b2   : > { %4336 = vmatprep.subr.bf16.mxu1 %v4824_v38 }
 0x1b3   : > { %4494 = vmatpush3.bf16.msra.mxu0 %v4806_v25 }
 0x1b4   : > { %4496 = vmatprep.subr.bf16.mxu0 %v4824_v38 }
 0x1b5   : > { %4338 = vmatpush3.bf16.msra.mxu1 %v4824_v38 }
 0x1b6   : > { %4340 = vmatprep.subr.bf16.mxu1 %v4838_v50 }
 0x1b7   : > { %4498 = vmatpush3.bf16.msra.mxu0 %v4824_v38 }
 0x1b8   : > { %4500 = vmatprep.subr.bf16.mxu0 %v4838_v50 }
 0x1b9   : > { %4342 = vmatpush3.bf16.msra.mxu1 %v4838_v50 }
 0x1ba   : > { %4344 = vmatprep.subr.bf16.mxu1 %v4852_v62 }
 0x1bb   : > { %4502 = vmatpush3.bf16.msra.mxu0 %v4838_v50  ;;  %v2156_v50 = vsub.f32 %v5364_v23, %v2155_v43 }
 0x1bc   : > { %4504 = vmatprep.subr.bf16.mxu0 %v4852_v62 }
 0x1bd   : > { %4346 = vmatpush3.bf16.msra.mxu1 %v4852_v62  ;;  %v2157_v59 = vand.u32 4294901760, %v2156_v50 }
 0x1be   : > { %4348 = vmatprep.subr.bf16.mxu1 %v4869_v14 }
 0x1bf   : > { %v3334_v17 = vpop.f32.mrb[0].mxu1  ;;  %4506 = vmatpush3.bf16.msra.mxu0 %v4852_v62 }
 0x1c0   : > { %v664_v25 = vpop.f32.mrb[1].mxu1  ;;  %4508 = vmatprep.subr.bf16.mxu0 %v4869_v14 }
 0x1c1   : > { %4350 = vmatpush3.bf16.msra.mxu1 %v4869_v14 }
 0x1c2   : > { %4352 = vmatprep.subr.bf16.mxu1 %v4914_v54 }
 0x1c3   : > { %v3337_v38 = vpop.f32.mrb[2].mxu1  ;;  %4510 = vmatpush3.bf16.msra.mxu0 %v4869_v14 }
 0x1c4   : > { %v676_v26 = vpop.f32.mrb[3].mxu1  ;;  %4512 = vmatprep.subr.bf16.mxu0 %v4914_v54 }
 0x1c5   : > { %4354 = vmatpush3.bf16.msra.mxu1 %v4914_v54 }
 0x1c6   : > { %4356 = vmatprep.subr.bf16.mxu1 %v4962_v20 }
 0x1c7   : > { %v3340_v62 = vpop.f32.mrb[4].mxu1  ;;  %4514 = vmatpush3.bf16.msra.mxu0 %v4914_v54 }
 0x1c8   : > { %v688_v2 = vpop.f32.mrb[5].mxu1  ;;  %4516 = vmatprep.subr.bf16.mxu0 %v4962_v20 }
 0x1c9   : > { %4358 = vmatpush3.bf16.msra.mxu1 %v4962_v20 }
 0x1cb   : > { %4518 = vmatpush3.bf16.msra.mxu0 %v4962_v20 }
 0x1cc   : > { %3766 = vmatmul.mubr.f32.vlgmr.msra.gmra.mrb[10].mxu1 %v2157_v59 }
 0x1ce   : > { %3941 = vmatmul.mubr.f32.vlgmr.msra.gmra.mrb[6].mxu0 %v5319_v44 }
 0x201   : > { %v3498_v14 = vpop.f32.mrb[0].mxu0 }
 0x202   : > { %v4519_v8 = vadd.f32 %v3498_v14, %v3334_v17  ;;  %v1198_v34 = vpop.f32.mrb[1].mxu0 }
 0x203   : > { %v4520_v22 = vadd.f32 %v1198_v34, %v664_v25 }
 0x205   : > { %v1232_v19 = vadd.f32 %v4520_v22, %v4519_v8  ;;  %v3501_v27 = vpop.f32.mrb[2].mxu0 }
 0x206   : > { %v4521_v58 = vadd.f32 %v3501_v27, %v3337_v38  ;;  %v1210_v7 = vpop.f32.mrb[3].mxu0 }
 0x207   : > { %v4522_v54 = vadd.f32 %v1210_v7, %v676_v26 }
 0x209   : > { %v1233_v4 = vadd.f32 %v4522_v54, %v1232_v19  ;;  %v3504_v5 = vpop.f32.mrb[4].mxu0 }
 0x20a   : > { %v4523_v24 = vadd.f32 %v3504_v5, %v3340_v62  ;;  %v1222_v42 = vpop.f32.mrb[5].mxu0 }
 0x20b   : > { %v4524_v45 = vadd.f32 %v1222_v42, %v688_v2  ;;  %v1234_v47 = vadd.f32 %v4521_v58, %v1233_v4 }
 0x20d   : > { %v1235_v41 = vadd.f32 %v4524_v45, %v1234_v47 }
 0x20f   : > { %v1236_v20 = vadd.f32 %v4523_v24, %v1235_v41 }
 0x211   : > { %v1237_v57 = vmul.f32 0.16666667, %v1236_v20 }
 0x213   : > { %v1238_v36 = vsub.f32 %v4520_v22, %v1237_v57  ;;  %v1241_v39 = vsub.f32 %v4519_v8, %v1237_v57  ;;  %v1244_v11 = vsub.f32 %v4522_v54, %v1237_v57  ;;  %v1247_v49 = vsub.f32 %v4521_v58, %v1237_v57 }
 0x214   : > { %v1250_v51 = vsub.f32 %v4524_v45, %v1237_v57  ;;  %v1253_v35 = vsub.f32 %v4523_v24, %v1237_v57 }
 0x215   : > { %v1239_v0 = vmul.f32 %v1238_v36, %v1238_v36  ;;  %v1242_v40 = vmul.f32 %v1241_v39, %v1241_v39  ;;  %v1245_v33 = vmul.f32 %v1244_v11, %v1244_v11  ;;  %v1248_v61 = vmul.f32 %v1247_v49, %v1247_v49 }
 0x216   : > { %v1251_v30 = vmul.f32 %v1250_v51, %v1250_v51  ;;  %v1254_v29 = vmul.f32 %v1253_v35, %v1253_v35 }
 0x217   : > { %v1243_v16 = vadd.f32 %v1242_v40, %v1239_v0 }
 0x219   : > { %v1246_v10 = vadd.f32 %v1245_v33, %v1243_v16 }
 0x21b   : > { %v1249_v63 = vadd.f32 %v1248_v61, %v1246_v10 }
 0x21d   : > { %v1252_v28 = vadd.f32 %v1251_v30, %v1249_v63 }
 0x21f   : > { %v1255_v18 = vadd.f32 %v1254_v29, %v1252_v28 }
 0x221   : > { %v1256_v46 = vmul.f32 0.2, %v1255_v18 }
 0x223   : > { %v1257_v32 = vmax.f32 %v1256_v46, 0.0 }
 0x225   : > { %4635 = vrsqrt.f32 %v1257_v32  ;;  %vm1260_vm15 = vcmp.eq.f32.partialorder %v1257_v32, inf  ;;  %v1263_v22 = vand.u32 2147483648, %v1257_v32  ;;  %vm1262_vm0 = vcmp.eq.f32.partialorder %v1257_v32, 0.0 }
 0x22f   : > { %v4636_v38 = vpop.eup %4635 }
 0x230   : > { %v1259_v50 = vmul.f32 %v4636_v38, %v1257_v32 }
 0x232   : > { %v1261_v2 = vsel %vm1260_vm15, %v1257_v32, %v1259_v50 }
 0x233   : > { %v1264_v58 = vsel %vm1262_vm0, %v1263_v22, %v1261_v2 }
 0x234   : > { %v1265_v42 = vsub.f32 1.0, %v1264_v58 }
 0x27f   : > { %v3729_v13 = vpop.f32.mrb[6].mxu1 }
 0x280   : > { %v2014_v15 = vpop.f32.mrb[7].mxu1 }
 0x281   : > { %v2036_v48 = vadd.f32 %v3729_v13, %v2014_v15 }
 0x283   : > { %v3732_v53 = vpop.f32.mrb[8].mxu1 }
 0x284   : > { %v2026_v56 = vpop.f32.mrb[9].mxu1 }
 0x285   : > { %v2037_v9 = vadd.f32 %v2036_v48, %v2026_v56 }
 0x287   : > { %v2038_v12 = vadd.f32 %v3732_v53, %v2037_v9 }
 0x289   : > { %v2039_v37 = vmul.f32 0.25, %v2038_v12 }
 0x28b   : > { %v2040_v1 = vsub.f32 %v2014_v15, %v2039_v37  ;;  %v2043_v60 = vsub.f32 %v3729_v13, %v2039_v37  ;;  %v2046_v3 = vsub.f32 %v2026_v56, %v2039_v37  ;;  %v2049_v21 = vsub.f32 %v3732_v53, %v2039_v37 }
 0x28d   : > { %v2041_v44 = vmul.f32 %v2040_v1, %v2040_v1  ;;  %v2044_v52 = vmul.f32 %v2043_v60, %v2043_v60  ;;  %v2047_v31 = vmul.f32 %v2046_v3, %v2046_v3  ;;  %v2050_v55 = vmul.f32 %v2049_v21, %v2049_v21 }
 0x28f   : > { %v2045_v23 = vadd.f32 %v2044_v52, %v2041_v44 }
 0x291   : > { %v2048_v43 = vadd.f32 %v2047_v31, %v2045_v23 }
 0x293   : > { %v2051_v6 = vadd.f32 %v2050_v55, %v2048_v43 }
 0x295   : > { %v2052_v17 = vmul.f32 0.33333334, %v2051_v6 }
 0x297   : > { %v2053_v25 = vmax.f32 %v2052_v17, 0.0 }
 0x299   : > { %4637 = vrsqrt.f32 %v2053_v25  ;;  %vm2056_vm1 = vcmp.eq.f32.partialorder %v2053_v25, inf  ;;  %v2059_v7 = vand.u32 2147483648, %v2053_v25  ;;  %vm2058_vm2 = vcmp.eq.f32.partialorder %v2053_v25, 0.0 }
 0x29f   : > { %v3767_v26 = vpop.f32.mrb[10].mxu1 }
 0x2a0   : > { %v2149_v62 = vpop.f32.mrb[11].mxu1 }
 0x2a1   : > { %v3942_v59 = vpop.f32.mrb[6].mxu0 }
 0x2a2   : > { %v4525_v14 = vadd.f32 %v3942_v59, %v3767_v26  ;;  %v2736_v8 = vpop.f32.mrb[7].mxu0 }
 0x2a3   : > { %v4638_v34 = vpop.eup %4637  ;;  %v4526_v19 = vadd.f32 %v2736_v8, %v2149_v62 }
 0x2a4   : > { %v2055_v27 = vmul.f32 %v4638_v34, %v2053_v25 }
 0x2a5   : > { %v2746_v54 = vadd.f32 %v4526_v19, %v4525_v14 }
 0x2a6   : > { %v2057_v4 = vsel %vm2056_vm1, %v2053_v25, %v2055_v27 }
 0x2a7   : > { %v2060_v5 = vsel %vm2058_vm2, %v2059_v7, %v2057_v4  ;;  %v2747_v24 = vmul.f32 0.5, %v2746_v54 }
 0x2a8   : > { %v2061_v45 = vsub.f32 1.0, %v2060_v5 }
 0x2a9   : > { %v2748_v47 = vsub.f32 %v4526_v19, %v2747_v24  ;;  %v2751_v41 = vsub.f32 %v4525_v14, %v2747_v24 }
 0x2aa   : > { %v2763_v20 = vadd.f32 %v2061_v45, %v1265_v42 }
 0x2ab   : > { %v2749_v57 = vmul.f32 %v2748_v47, %v2748_v47  ;;  %v2752_v36 = vmul.f32 %v2751_v41, %v2751_v41 }
 0x2ad   : > { %v2753_v39 = vadd.f32 %v2752_v36, %v2749_v57 }
 0x2af   : > { %v2754_v11 = vmax.f32 %v2753_v39, 0.0 }
 0x2b1   : > { %4639 = vrsqrt.f32 %v2754_v11  ;;  %vm2757_vm3 = vcmp.eq.f32.partialorder %v2754_v11, inf  ;;  %v2760_v35 = vand.u32 2147483648, %v2754_v11  ;;  %vm2759_vm4 = vcmp.eq.f32.partialorder %v2754_v11, 0.0 }
 0x2bb   : > { %v4640_v49 = vpop.eup %4639 }
 0x2bc   : > { %v2756_v51 = vmul.f32 %v4640_v49, %v2754_v11 }
 0x2be   : > { %v2758_v0 = vsel %vm2757_vm3, %v2754_v11, %v2756_v51 }
 0x2bf   : > { %v2761_v40 = vsel %vm2759_vm4, %v2760_v35, %v2758_v0 }
 0x2c0   : > { %v2762_v16 = vsub.f32 1.0, %v2761_v40 }
 0x2c2   : > { %v2764_v33 = vadd.f32 %v2763_v20, %v2762_v16 }
 0x2c4   : > { %v2765_v10 = vmul.f32 0.33333334, %v2764_v33 }
 0x2c6   : > { %v2766_v61 = vsub.f32 %v1265_v42, %v2765_v10  ;;  %v2768_v63 = vsub.f32 %v2061_v45, %v2765_v10  ;;  %v2771_v30 = vsub.f32 %v2762_v16, %v2765_v10 }
 0x2c8   : > { %v2767_v28 = vmul.f32 %v2766_v61, %v2766_v61  ;;  %v2769_v29 = vmul.f32 %v2768_v63, %v2768_v63  ;;  %v2772_v13 = vmul.f32 %v2771_v30, %v2771_v30 }
 0x2ca   : > { %v2770_v18 = vadd.f32 %v2769_v29, %v2767_v28 }
 0x2cc   : > { %v2773_v15 = vadd.f32 %v2772_v13, %v2770_v18 }
 0x2ce   : > { %v2774_v48 = vmul.f32 0.5, %v2773_v15 }
 0x2d0   : > { %v2775_v53 = vmax.f32 %v2774_v48, 0.0 }
 0x2d2   : > { %4641 = vrsqrt.f32 %v2775_v53  ;;  %vm2778_vm5 = vcmp.eq.f32.partialorder %v2775_v53, inf  ;;  %v2781_v12 = vand.u32 2147483648, %v2775_v53  ;;  %vm2780_vm6 = vcmp.eq.f32.partialorder %v2775_v53, 0.0 }
 0x2dc   : > { %v4642_v56 = vpop.eup %4641 }
 0x2dd   : > { %v2777_v9 = vmul.f32 %v4642_v56, %v2775_v53 }
 0x2df   : > { %v2779_v46 = vsel %vm2778_vm5, %v2775_v53, %v2777_v9 }
 0x2e0   : > { %v2782_v37 = vsel %vm2780_vm6, %v2781_v12, %v2779_v46 }
 0x2e1   : > { %2783 = vst [vmem:[%s239_s9] sm:$0xff] %v2782_v37 }
 0x2e2 PF: > { %s13_s16 = sadd.s32 1, %s4681_s16   ;;  %s5550_s12 = smov %s4673_s14 }
 0x2e3   : > { %p10_p9 = scmp.ge.s32.totalorder %s13_s16, 6   ;;  %s5551_s13 = smov %s4677_s15 }
 0x2e4   : > { %s5552_s14 = smov %s5555_s17  ;;  %s5553_s15 = smov %s5559_s18 }
 0x2e5   :  { %12 = sbr.rel (!%p10_p9) target bundleno = 3 (0x3), region = 65 }

</bundles_post_ra>
